<compile_context>
chip_gen: v5e
topology: v5e:2x2
jax: 0.10.0
libtpu: 0.0.40
codegen_flags: <defaults>
</compile_context>

<pallas_src>
import functools

import jax
import jax.numpy as jnp
import numpy as np
from jax.experimental import pallas as pl
from jax.experimental.pallas import tpu as pltpu


def _round_up(n, m):
    return ((n + m - 1) // m) * m


def _pad_last_halves(a, c_old, c_new):
    """Last dim is 2*c_old (two concatenated halves); pad each half to c_new."""
    first, second = a[..., :c_old], a[..., c_old:]
    pad = [(0, 0)] * (a.ndim - 1) + [(0, c_new - c_old)]
    return jnp.concatenate([jnp.pad(first, pad), jnp.pad(second, pad)], axis=-1)


def posterior_encoder_kernel(
    # scalar prefetch (SMEM)
    dil_ref,
    # inputs
    x_ref, mask_ref, noise_ref,
    wpre_ref, bpre_ref, win_ref, bin_ref, wrs_ref, brs_ref,
    wpost_ref, bpost_ref,
    # outputs
    z_ref, m_ref, logs_ref,
    # scratch
    halo_ref, skip_ref,
    *, channels_p, out_channels_p, kernel_size, num_layers, halo_off,
    static_dilation):
    Cp = channels_p
    Op = out_channels_p
    K = kernel_size
    L = num_layers
    T = skip_ref.shape[0]
    center = (K - 1) // 2
    halo_rows = halo_ref.shape[0]
    bf16, f32 = jnp.bfloat16, jnp.float32

    layer = pl.program_id(1)
    mask = mask_ref[0]                          # (T, 1): lane-broadcast at each use

    # ---- layer 0: pre 1x1 conv, zero halo pad rows & skip accumulator ------
    @pl.when(layer == 0)
    def _init():
        # Only the pad rows need zeroing (the centre is rewritten every layer);
        # out-of-range conv taps must read exact zeros.
        if halo_off > 0:
            halo_ref[0:halo_off, :] = jnp.zeros((halo_off, Cp), halo_ref.dtype)
        if halo_rows > halo_off + T:
            halo_ref[halo_off + T:halo_rows, :] = jnp.zeros(
                (halo_rows - halo_off - T, Cp), halo_ref.dtype)
        # pre 1x1 conv -> MXU matmul; hidden state lives in the halo centre
        x = x_ref[0]
        halo_ref[halo_off:halo_off + T, :] = (
            jnp.dot(x.astype(bf16), wpre_ref[...],
                    preferred_element_type=f32) + bpre_ref[...]) * mask
        skip_ref[...] = jnp.zeros_like(skip_ref)

    # ---- dilated conv: K accumulating MXU dots over shifted halo views -----
    if static_dilation is not None:
        dil = static_dilation                   # python int -> static slice starts
    else:
        dil = dil_ref[layer]                    # SMEM scalar -> dynamic slice starts
    acc = jnp.zeros((T, 2 * Cp), f32)
    for j in range(K):                          # K is small; unrolled at trace time
        start = halo_off + (j - center) * dil
        acc = acc + jnp.dot(halo_ref[pl.ds(start, T), :].astype(bf16),
                            win_ref[0, j], preferred_element_type=f32)
    acc = acc + bin_ref[0]
    # gated activation (f32 elementwise; splits are lane-aligned at Cp)
    gate = jnp.tanh(acc[:, :Cp]) * jax.nn.sigmoid(acc[:, Cp:])

    # res_skip 1x1 conv
    rs = (jnp.dot(gate.astype(bf16), wrs_ref[0],
                  preferred_element_type=f32) + brs_ref[0])

    @pl.when(layer < L - 1)
    def _residual():
        h = halo_ref[halo_off:halo_off + T, :]
        halo_ref[halo_off:halo_off + T, :] = (h + rs[:, :Cp]) * mask
        skip_ref[...] = skip_ref[...] + rs[:, Cp:]

    @pl.when(layer == L - 1)
    def _finalize():
        # Last WaveNet layer feeds only the skip path.  Loader contract: the
        # final res_skip conv (C -> C) must be packed into the *skip* half
        # (columns [C:2C]) of w_rs[L-1] with the residual half zeroed.
        out = (skip_ref[...] + rs[:, Cp:]) * mask
        # post 1x1 conv, then reparameterisation z = m + exp(logs) * noise
        stats = (jnp.dot(out.astype(bf16), wpost_ref[...],
                         preferred_element_type=f32) + bpost_ref[...])
        m = stats[:, :Op] * mask
        logs = stats[:, Op:] * mask
        z_ref[0] = (m + jnp.exp(logs) * noise_ref[0]) * mask
        m_ref[0] = m
        logs_ref[0] = logs


def posterior_encoder(x, mask, noise, params, *, channels, out_channels,
                      kernel_size, dilation_rate, num_layers):
    assert kernel_size % 2 == 1, "odd kernel_size expected (Conv1d 'same' pad)"
    B, T, Cin = x.shape
    C = channels
    K = kernel_size
    L = num_layers
    Cp = _round_up(C, 128)
    Op = _round_up(out_channels, 128)
    max_pad = (dilation_rate ** (L - 1)) * (K - 1) // 2       # receptive half-width
    halo_off = _round_up(max_pad, 8)                          # sublane-aligned centre
    halo_rows = halo_off + T + max_pad
    f32, bf16 = jnp.float32, jnp.bfloat16

    # ---- pad channels to lane multiples; matmul operands in bf16 ----------
    w_pre = jnp.pad(params["w_pre"], ((0, 0), (0, Cp - C))).astype(bf16)
    b_pre = jnp.pad(params["b_pre"], ((0, 0), (0, Cp - C))).astype(f32)

    w_in = _pad_last_halves(params["w_in"], C, Cp)                   # (L,K,C,2Cp)
    w_in = jnp.pad(w_in, ((0, 0), (0, 0), (0, Cp - C), (0, 0))).astype(bf16)
    b_in = _pad_last_halves(params["b_in"], C, Cp).astype(f32)       # (L,1,2Cp)

    w_rs = _pad_last_halves(params["w_rs"], C, Cp)                   # (L,C,2Cp)
    w_rs = jnp.pad(w_rs, ((0, 0), (0, Cp - C), (0, 0))).astype(bf16)
    b_rs = _pad_last_halves(params["b_rs"], C, Cp).astype(f32)       # (L,1,2Cp)

    w_post = _pad_last_halves(params["w_post"], out_channels, Op)    # (C,2Op)
    w_post = jnp.pad(w_post, ((0, Cp - C), (0, 0))).astype(bf16)     # (Cp,2Op)
    b_post = _pad_last_halves(params["b_post"], out_channels, Op).astype(f32)

    noise_p = jnp.pad(noise, ((0, 0), (0, 0), (0, Op - out_channels)))
    dilations = jnp.asarray([dilation_rate ** l for l in range(L)], jnp.int32)
    static_dilation = 1 if dilation_rate == 1 else None

    # ---- explicit VMEM footprint (double-buffered blocks + scratch) -------
    def _nbytes(shape, itemsize):
        n = itemsize
        for s in shape:
            n *= s
        return n

    footprint = (
        # batch-indexed I/O blocks (x, mask, noise + 3 outputs), x2 buffers
        2 * (_nbytes((T, Cin), 4) + _nbytes((T, 1), 4) + 4 * _nbytes((T, Op), 4))
        # per-layer streamed conv weights, x2 buffers
        + 2 * (_nbytes((K, Cp, 2 * Cp), 2) + _nbytes((Cp, 2 * Cp), 2)
               + 2 * _nbytes((1, 2 * Cp), 4))
        # constant-index (resident) pre/post weights (count x2: conservative)
        + 2 * (_nbytes((Cin, Cp), 2) + _nbytes((1, Cp), 4)
               + _nbytes((Cp, 2 * Op), 2) + _nbytes((1, 2 * Op), 4))
        # scratch: f32 halo (hidden state + conv pads) and skip accumulator
        + _nbytes((halo_rows, Cp), 4) + _nbytes((T, Cp), 4))

    try:
        cap = int(pltpu.get_tpu_info().vmem_capacity_bytes) * 3 // 4
    except Exception:
        cap = 48 * 1024 * 1024           # conservative cross-generation fallback
    cap = min(cap, 100 * 1024 * 1024)
    if footprint > cap:
        raise ValueError(
            f"PosteriorEncoder kernel needs ~{footprint / 2**20:.1f} MiB of VMEM "
            f"but the budget is {cap / 2**20:.1f} MiB. Note the conv halo grows "
            f"as dilation_rate**(num_layers-1)*(kernel_size-1)/2 rows; large "
            f"dilated configs need a time-tiled scheme.")

    kern = functools.partial(
        posterior_encoder_kernel,
        channels_p=Cp, out_channels_p=Op, kernel_size=K, num_layers=L,
        halo_off=halo_off, static_dilation=static_dilation)

    def _const(a):                       # whole array resident, constant index
        zeros = (0,) * a.ndim
        return pl.BlockSpec(a.shape, lambda b, l, d, _z=zeros: _z)

    def _layer(a):                       # one layer's weights per grid step
        trail = (0,) * (a.ndim - 1)
        return pl.BlockSpec((1,) + a.shape[1:],
                            lambda b, l, d, _t=trail: (l,) + _t)

    def _batch(c):                       # one batch row per grid step
        return pl.BlockSpec((1, T, c), lambda b, l, d: (b, 0, 0))

    in_specs = [
        _batch(Cin),                     # x
        _batch(1),                       # mask
        _batch(Op),                      # noise (lane-padded)
        _const(w_pre), _const(b_pre),
        _layer(w_in), _layer(b_in), _layer(w_rs), _layer(b_rs),
        _const(w_post), _const(b_post),
    ]
    out_specs = [_batch(Op), _batch(Op), _batch(Op)]
    out_shape = (
        jax.ShapeDtypeStruct((B, T, Op), f32),
        jax.ShapeDtypeStruct((B, T, Op), f32),
        jax.ShapeDtypeStruct((B, T, Op), f32),
    )
    scratch_shapes = [
        pltpu.VMEM((halo_rows, Cp), f32),   # hidden state + zero conv halo
        pltpu.VMEM((T, Cp), f32),           # skip accumulator
    ]

    grid_spec = pltpu.PrefetchScalarGridSpec(
        num_scalar_prefetch=1,
        grid=(B, L),                        # layer axis on grid -> weight streaming
        in_specs=in_specs,
        out_specs=out_specs,
        scratch_shapes=scratch_shapes,
    )

    z, m, logs = pl.pallas_call(
        kern,
        out_shape=out_shape,
        grid_spec=grid_spec,
        compiler_params=pltpu.CompilerParams(
            dimension_semantics=("parallel", "arbitrary"),
            vmem_limit_bytes=cap),
    )(dilations, x, mask, noise_p,
      w_pre, b_pre, w_in, b_in, w_rs, b_rs, w_post, b_post)

    # strip lane padding (outputs stay 128-lane dense inside the kernel)
    oc = out_channels
    return z[..., :oc], m[..., :oc], logs[..., :oc]


def reference_forward(x, mask, noise, p, *, channels, out_channels,
                      kernel_size, dilation_rate, num_layers,
                      matmul_dtype=jnp.float32):
    """Pure-JAX reference with identical semantics (for validation).

    matmul_dtype=bfloat16 mirrors the kernel's MXU operand precision while
    keeping f32 accumulation and f32 elementwise math.
    """
    C = channels
    K = kernel_size
    T = x.shape[1]
    md = matmul_dtype

    def mm(a, b):
        return jnp.einsum("btc,cd->btd", a.astype(md), b.astype(md),
                          preferred_element_type=jnp.float32)

    h = (mm(x, p["w_pre"]) + p["b_pre"]) * mask
    skip = jnp.zeros_like(h)
    for layer in range(num_layers):
        dil = dilation_rate ** layer
        pad = dil * (K - 1) // 2
        hp = jnp.pad(h, ((0, 0), (pad, pad), (0, 0)))
        acc = jnp.zeros(h.shape[:2] + (2 * C,), jnp.float32) + p["b_in"][layer]
        for j in range(K):
            xs = hp[:, j * dil: j * dil + T]
            acc = acc + mm(xs, p["w_in"][layer, j])
        gate = jnp.tanh(acc[..., :C]) * jax.nn.sigmoid(acc[..., C:])
        rs = mm(gate, p["w_rs"][layer]) + p["b_rs"][layer]
        if layer < num_layers - 1:
            h = (h + rs[..., :C]) * mask
        skip = skip + rs[..., C:]
    out = skip * mask
    stats = (mm(out, p["w_post"]) + p["b_post"]) * mask
    m = stats[..., :out_channels]
    logs = stats[..., out_channels:]
    z = (m + jnp.exp(logs) * noise) * mask
    return z, m, logs


if __name__ == "__main__":
    # small config consistent with the module
    B, T = 2, 16
    in_channels = 8
    channels = 32
    out_channels = 8
    kernel_size = 5
    num_layers = 3

    key = jax.random.PRNGKey(0)
    ks = jax.random.split(key, 10)
    scale = 0.1

    params = {
        "w_pre": jax.random.normal(ks[0], (in_channels, channels), jnp.float32) * scale,
        "b_pre": jax.random.normal(ks[1], (1, channels), jnp.float32) * scale,
        "w_in": jax.random.normal(
            ks[2], (num_layers, kernel_size, channels, 2 * channels), jnp.float32) * scale,
        "b_in": jax.random.normal(
            ks[3], (num_layers, 1, 2 * channels), jnp.float32) * scale,
        "w_rs": jax.random.normal(
            ks[4], (num_layers, channels, 2 * channels), jnp.float32) * scale,
        "b_rs": jax.random.normal(
            ks[5], (num_layers, 1, 2 * channels), jnp.float32) * scale,
        "w_post": jax.random.normal(
            ks[6], (channels, 2 * out_channels), jnp.float32) * scale,
        "b_post": jax.random.normal(
            ks[7], (1, 2 * out_channels), jnp.float32) * scale,
    }
    # Loader contract: last WaveNet layer's res_skip conv is (C -> C) and feeds
    # only the skip path; pack it into the skip half and zero the residual half.
    params["w_rs"] = params["w_rs"].at[num_layers - 1, :, :channels].set(0.0)
    params["b_rs"] = params["b_rs"].at[num_layers - 1, :, :channels].set(0.0)

    # inputs: x (B, T, Cin); mask (B, T, 1) from lengths; noise == randn_like(m)
    x = jax.random.normal(ks[8], (B, T, in_channels), jnp.float32)
    lengths = jnp.array([T, T - 4], jnp.int32)
    mask = (jnp.arange(T)[None, :] < lengths[:, None]).astype(jnp.float32)[..., None]
    noise = jax.random.normal(ks[9], (B, T, out_channels), jnp.float32)

    # dilation_rate=1 exercises the static-offset path (standard VITS posterior
    # encoder); dilation_rate=2 exercises the SMEM-prefetched dynamic path.
    for dilation_rate in (1, 2):
        cfg = dict(channels=channels, out_channels=out_channels,
                   kernel_size=kernel_size, dilation_rate=dilation_rate,
                   num_layers=num_layers)
        z, m, logs = posterior_encoder(x, mask, noise, params, **cfg)
        jax.block_until_ready((z, m, logs))

        # exact-semantics check against a reference using the same bf16 MXU
        # operand precision (f32 accumulation / elementwise)
        z_bf, m_bf, l_bf = reference_forward(x, mask, noise, params, **cfg,
                                             matmul_dtype=jnp.bfloat16)
        np.testing.assert_allclose(np.asarray(z), np.asarray(z_bf), rtol=1e-3, atol=1e-3)
        np.testing.assert_allclose(np.asarray(m), np.asarray(m_bf), rtol=1e-3, atol=1e-3)
        np.testing.assert_allclose(np.asarray(logs), np.asarray(l_bf), rtol=1e-3, atol=1e-3)

        # sanity check against the full-f32 reference (bounds the bf16 error)
        z_f, m_f, l_f = reference_forward(x, mask, noise, params, **cfg,
                                          matmul_dtype=jnp.float32)
        np.testing.assert_allclose(np.asarray(z), np.asarray(z_f), rtol=5e-2, atol=5e-2)
        np.testing.assert_allclose(np.asarray(m), np.asarray(m_f), rtol=5e-2, atol=5e-2)
        np.testing.assert_allclose(np.asarray(logs), np.asarray(l_f), rtol=5e-2, atol=5e-2)

    print("KERNEL_OK")
</pallas_src>

<mosaic_0001>
module attributes {stable_mosaic.version = 11 : i64} {
  func.func @posterior_encoder_kernel(%arg0: i32, %arg1: i32, %arg2: memref<3xi32, #tpu.memory_space<smem>>, %arg3: memref<1x16x8xf32, #tpu.memory_space<vmem>>, %arg4: memref<1x16x1xf32, #tpu.memory_space<vmem>>, %arg5: memref<1x16x128xf32, #tpu.memory_space<vmem>>, %arg6: memref<8x128xbf16, #tpu.memory_space<vmem>>, %arg7: memref<1x128xf32, #tpu.memory_space<vmem>>, %arg8: memref<1x5x128x256xbf16, #tpu.memory_space<vmem>>, %arg9: memref<1x1x256xf32, #tpu.memory_space<vmem>>, %arg10: memref<1x128x256xbf16, #tpu.memory_space<vmem>>, %arg11: memref<1x1x256xf32, #tpu.memory_space<vmem>>, %arg12: memref<128x256xbf16, #tpu.memory_space<vmem>>, %arg13: memref<1x256xf32, #tpu.memory_space<vmem>>, %arg14: memref<1x16x128xf32, #tpu.memory_space<vmem>>, %arg15: memref<1x16x128xf32, #tpu.memory_space<vmem>>, %arg16: memref<1x16x128xf32, #tpu.memory_space<vmem>>, %arg17: memref<26x128xf32, #tpu.memory_space<vmem>>, %arg18: memref<16x128xf32, #tpu.memory_space<vmem>>) attributes {dimension_semantics = [#tpu.dimension_semantics<parallel>, #tpu.dimension_semantics<arbitrary>], iteration_bounds = array<i64: 2, 3>, scalar_prefetch = 1 : i64, scratch_operands = 2 : i64, tpu.core_type = #tpu.core_type<tc>, window_params = [{transform_indices = @transform_0, window_bounds = array<i64: 1, 16, 8>}, {transform_indices = @transform_1, window_bounds = array<i64: 1, 16, 1>}, {transform_indices = @transform_2, window_bounds = array<i64: 1, 16, 128>}, {pipeline_mode = #tpu.pipeline_mode<synchronous>, transform_indices = @transform_3, window_bounds = array<i64: 8, 128>}, {pipeline_mode = #tpu.pipeline_mode<synchronous>, transform_indices = @transform_4, window_bounds = array<i64: 1, 128>}, {transform_indices = @transform_5, window_bounds = array<i64: 1, 5, 128, 256>}, {transform_indices = @transform_6, window_bounds = array<i64: 1, 1, 256>}, {transform_indices = @transform_7, window_bounds = array<i64: 1, 128, 256>}, {transform_indices = @transform_8, window_bounds = array<i64: 1, 1, 256>}, {pipeline_mode = #tpu.pipeline_mode<synchronous>, transform_indices = @transform_9, window_bounds = array<i64: 128, 256>}, {pipeline_mode = #tpu.pipeline_mode<synchronous>, transform_indices = @transform_10, window_bounds = array<i64: 1, 256>}, {transform_indices = @transform_11, window_bounds = array<i64: 1, 16, 128>}, {transform_indices = @transform_12, window_bounds = array<i64: 1, 16, 128>}, {transform_indices = @transform_13, window_bounds = array<i64: 1, 16, 128>}]} {
    %c0 = arith.constant 0 : index
    %c0_0 = arith.constant 0 : index
    %c0_1 = arith.constant 0 : index
    %0 = vector.load %arg4[%c0, %c0_0, %c0_1] : memref<1x16x1xf32, #tpu.memory_space<vmem>>, vector<1x16x1xf32>
    %1 = vector.shape_cast %0 : vector<1x16x1xf32> to vector<16x1xf32>
    %c0_i32 = arith.constant 0 : i32
    %2 = arith.cmpi eq, %arg1, %c0_i32 : i32
    %3 = arith.extui %2 : i1 to i32
    %c0_i32_2 = arith.constant 0 : i32
    %4 = arith.cmpi ne, %3, %c0_i32_2 : i32
    scf.if %4 {
      %cst_43 = arith.constant 0.000000e+00 : f32
      %63 = vector.broadcast %cst_43 : f32 to vector<8x128xf32>
      %c0_44 = arith.constant 0 : index
      %c0_45 = arith.constant 0 : index
      %64 = vector.load %arg17[%c0_44, %c0_45] : memref<26x128xf32, #tpu.memory_space<vmem>>, vector<8x128xf32>
      tpu.vector_store %arg17[%c0_44, %c0_45], %63 {strides = array<i32>} : memref<26x128xf32, #tpu.memory_space<vmem>>, vector<8x128xf32>,
      %cst_46 = arith.constant 0.000000e+00 : f32
      %65 = vector.broadcast %cst_46 : f32 to vector<2x128xf32>
      %c24 = arith.constant 24 : index
      %c0_47 = arith.constant 0 : index
      %66 = vector.load %arg17[%c24, %c0_47] : memref<26x128xf32, #tpu.memory_space<vmem>>, vector<2x128xf32>
      tpu.vector_store %arg17[%c24, %c0_47], %65 {strides = array<i32>} : memref<26x128xf32, #tpu.memory_space<vmem>>, vector<2x128xf32>,
      %c0_48 = arith.constant 0 : index
      %c0_49 = arith.constant 0 : index
      %c0_50 = arith.constant 0 : index
      %67 = vector.load %arg3[%c0_48, %c0_49, %c0_50] : memref<1x16x8xf32, #tpu.memory_space<vmem>>, vector<1x16x8xf32>
      %68 = vector.shape_cast %67 : vector<1x16x8xf32> to vector<16x8xf32>
      %69 = arith.truncf %68 : vector<16x8xf32> to vector<16x8xbf16>
      %c0_51 = arith.constant 0 : index
      %c0_52 = arith.constant 0 : index
      %70 = vector.load %arg6[%c0_51, %c0_52] : memref<8x128xbf16, #tpu.memory_space<vmem>>, vector<8x128xbf16>
      %cst_53 = arith.constant dense<0.000000e+00> : vector<16x128xf32>
      %71 = tpu.matmul %69, %70, %cst_53 {dimension_numbers = #tpu.dot_dimension_numbers<[1], [0], [0], [1], [0, 0, 1, 1], [], []>} : vector<16x8xbf16>, vector<8x128xbf16>, vector<16x128xf32> -> vector<16x128xf32>
      %c0_54 = arith.constant 0 : index
      %c0_55 = arith.constant 0 : index
      %72 = vector.load %arg7[%c0_54, %c0_55] : memref<1x128xf32, #tpu.memory_space<vmem>>, vector<1x128xf32>
      %73 = vector.broadcast %72 : vector<1x128xf32> to vector<16x128xf32>
      %74 = arith.addf %71, %73 : vector<16x128xf32>
      %75 = vector.broadcast %1 : vector<16x1xf32> to vector<16x128xf32>
      %76 = arith.mulf %74, %75 : vector<16x128xf32>
      %c8_56 = arith.constant 8 : index
      %c0_57 = arith.constant 0 : index
      %77 = vector.load %arg17[%c8_56, %c0_57] : memref<26x128xf32, #tpu.memory_space<vmem>>, vector<16x128xf32>
      tpu.vector_store %arg17[%c8_56, %c0_57], %76 {strides = array<i32>} : memref<26x128xf32, #tpu.memory_space<vmem>>, vector<16x128xf32>,
      %cst_58 = arith.constant 0.000000e+00 : f32
      %78 = vector.broadcast %cst_58 : f32 to vector<16x128xf32>
      %c0_59 = arith.constant 0 : index
      %c0_60 = arith.constant 0 : index
      %79 = vector.load %arg18[%c0_59, %c0_60] : memref<16x128xf32, #tpu.memory_space<vmem>>, vector<16x128xf32>
      tpu.vector_store %arg18[%c0_59, %c0_60], %78 {strides = array<i32>} : memref<16x128xf32, #tpu.memory_space<vmem>>, vector<16x128xf32>,
    } else {
    }
    %cst = arith.constant 0.000000e+00 : f32
    %5 = vector.broadcast %cst : f32 to vector<16x256xf32>
    %c6 = arith.constant 6 : index
    %c0_3 = arith.constant 0 : index
    %6 = vector.load %arg17[%c6, %c0_3] : memref<26x128xf32, #tpu.memory_space<vmem>>, vector<16x128xf32>
    %7 = arith.truncf %6 : vector<16x128xf32> to vector<16x128xbf16>
    %c0_4 = arith.constant 0 : index
    %c0_5 = arith.constant 0 : index
    %c0_6 = arith.constant 0 : index
    %c0_7 = arith.constant 0 : index
    %8 = vector.load %arg8[%c0_4, %c0_5, %c0_6, %c0_7] : memref<1x5x128x256xbf16, #tpu.memory_space<vmem>>, vector<1x1x128x256xbf16>
    %9 = vector.shape_cast %8 : vector<1x1x128x256xbf16> to vector<128x256xbf16>
    %cst_8 = arith.constant dense<0.000000e+00> : vector<16x256xf32>
    %10 = tpu.matmul %7, %9, %cst_8 {dimension_numbers = #tpu.dot_dimension_numbers<[1], [0], [0], [1], [0, 0, 1, 1], [], []>} : vector<16x128xbf16>, vector<128x256xbf16>, vector<16x256xf32> -> vector<16x256xf32>
    %11 = arith.addf %5, %10 : vector<16x256xf32>
    %c7 = arith.constant 7 : index
    %c0_9 = arith.constant 0 : index
    %12 = vector.load %arg17[%c7, %c0_9] : memref<26x128xf32, #tpu.memory_space<vmem>>, vector<16x128xf32>
    %13 = arith.truncf %12 : vector<16x128xf32> to vector<16x128xbf16>
    %c0_10 = arith.constant 0 : index
    %c1 = arith.constant 1 : index
    %c0_11 = arith.constant 0 : index
    %c0_12 = arith.constant 0 : index
    %14 = vector.load %arg8[%c0_10, %c1, %c0_11, %c0_12] : memref<1x5x128x256xbf16, #tpu.memory_space<vmem>>, vector<1x1x128x256xbf16>
    %15 = vector.shape_cast %14 : vector<1x1x128x256xbf16> to vector<128x256xbf16>
    %cst_13 = arith.constant dense<0.000000e+00> : vector<16x256xf32>
    %16 = tpu.matmul %13, %15, %cst_13 {dimension_numbers = #tpu.dot_dimension_numbers<[1], [0], [0], [1], [0, 0, 1, 1], [], []>} : vector<16x128xbf16>, vector<128x256xbf16>, vector<16x256xf32> -> vector<16x256xf32>
    %17 = arith.addf %11, %16 : vector<16x256xf32>
    %c8 = arith.constant 8 : index
    %c0_14 = arith.constant 0 : index
    %18 = vector.load %arg17[%c8, %c0_14] : memref<26x128xf32, #tpu.memory_space<vmem>>, vector<16x128xf32>
    %19 = arith.truncf %18 : vector<16x128xf32> to vector<16x128xbf16>
    %c0_15 = arith.constant 0 : index
    %c2 = arith.constant 2 : index
    %c0_16 = arith.constant 0 : index
    %c0_17 = arith.constant 0 : index
    %20 = vector.load %arg8[%c0_15, %c2, %c0_16, %c0_17] : memref<1x5x128x256xbf16, #tpu.memory_space<vmem>>, vector<1x1x128x256xbf16>
    %21 = vector.shape_cast %20 : vector<1x1x128x256xbf16> to vector<128x256xbf16>
    %cst_18 = arith.constant dense<0.000000e+00> : vector<16x256xf32>
    %22 = tpu.matmul %19, %21, %cst_18 {dimension_numbers = #tpu.dot_dimension_numbers<[1], [0], [0], [1], [0, 0, 1, 1], [], []>} : vector<16x128xbf16>, vector<128x256xbf16>, vector<16x256xf32> -> vector<16x256xf32>
    %23 = arith.addf %17, %22 : vector<16x256xf32>
    %c9 = arith.constant 9 : index
    %c0_19 = arith.constant 0 : index
    %24 = vector.load %arg17[%c9, %c0_19] : memref<26x128xf32, #tpu.memory_space<vmem>>, vector<16x128xf32>
    %25 = arith.truncf %24 : vector<16x128xf32> to vector<16x128xbf16>
    %c0_20 = arith.constant 0 : index
    %c3 = arith.constant 3 : index
    %c0_21 = arith.constant 0 : index
    %c0_22 = arith.constant 0 : index
    %26 = vector.load %arg8[%c0_20, %c3, %c0_21, %c0_22] : memref<1x5x128x256xbf16, #tpu.memory_space<vmem>>, vector<1x1x128x256xbf16>
    %27 = vector.shape_cast %26 : vector<1x1x128x256xbf16> to vector<128x256xbf16>
    %cst_23 = arith.constant dense<0.000000e+00> : vector<16x256xf32>
    %28 = tpu.matmul %25, %27, %cst_23 {dimension_numbers = #tpu.dot_dimension_numbers<[1], [0], [0], [1], [0, 0, 1, 1], [], []>} : vector<16x128xbf16>, vector<128x256xbf16>, vector<16x256xf32> -> vector<16x256xf32>
    %29 = arith.addf %23, %28 : vector<16x256xf32>
    %c10 = arith.constant 10 : index
    %c0_24 = arith.constant 0 : index
    %30 = vector.load %arg17[%c10, %c0_24] : memref<26x128xf32, #tpu.memory_space<vmem>>, vector<16x128xf32>
    %31 = arith.truncf %30 : vector<16x128xf32> to vector<16x128xbf16>
    %c0_25 = arith.constant 0 : index
    %c4 = arith.constant 4 : index
    %c0_26 = arith.constant 0 : index
    %c0_27 = arith.constant 0 : index
    %32 = vector.load %arg8[%c0_25, %c4, %c0_26, %c0_27] : memref<1x5x128x256xbf16, #tpu.memory_space<vmem>>, vector<1x1x128x256xbf16>
    %33 = vector.shape_cast %32 : vector<1x1x128x256xbf16> to vector<128x256xbf16>
    %cst_28 = arith.constant dense<0.000000e+00> : vector<16x256xf32>
    %34 = tpu.matmul %31, %33, %cst_28 {dimension_numbers = #tpu.dot_dimension_numbers<[1], [0], [0], [1], [0, 0, 1, 1], [], []>} : vector<16x128xbf16>, vector<128x256xbf16>, vector<16x256xf32> -> vector<16x256xf32>
    %35 = arith.addf %29, %34 : vector<16x256xf32>
    %c0_29 = arith.constant 0 : index
    %c0_30 = arith.constant 0 : index
    %c0_31 = arith.constant 0 : index
    %36 = vector.load %arg9[%c0_29, %c0_30, %c0_31] : memref<1x1x256xf32, #tpu.memory_space<vmem>>, vector<1x1x256xf32>
    %37 = vector.shape_cast %36 : vector<1x1x256xf32> to vector<1x256xf32>
    %38 = vector.broadcast %37 : vector<1x256xf32> to vector<16x256xf32>
    %39 = arith.addf %35, %38 : vector<16x256xf32>
    %40 = vector.extract_strided_slice %39 {offsets = [0, 0], sizes = [16, 128], strides = [1, 1]} : vector<16x256xf32> to vector<16x128xf32>
    %41 = math.tanh %40 : vector<16x128xf32>
    %42 = vector.extract_strided_slice %39 {offsets = [0, 128], sizes = [16, 128], strides = [1, 1]} : vector<16x256xf32> to vector<16x128xf32>
    %43 = arith.negf %42 : vector<16x128xf32>
    %44 = math.exp %43 : vector<16x128xf32>
    %cst_32 = arith.constant 1.000000e+00 : f32
    %45 = vector.broadcast %cst_32 : f32 to vector<16x128xf32>
    %46 = arith.addf %45, %44 : vector<16x128xf32>
    %47 = arith.divf %45, %46 : vector<16x128xf32>
    %48 = arith.mulf %41, %47 : vector<16x128xf32>
    %49 = arith.truncf %48 : vector<16x128xf32> to vector<16x128xbf16>
    %c0_33 = arith.constant 0 : index
    %c0_34 = arith.constant 0 : index
    %c0_35 = arith.constant 0 : index
    %50 = vector.load %arg10[%c0_33, %c0_34, %c0_35] : memref<1x128x256xbf16, #tpu.memory_space<vmem>>, vector<1x128x256xbf16>
    %51 = vector.shape_cast %50 : vector<1x128x256xbf16> to vector<128x256xbf16>
    %cst_36 = arith.constant dense<0.000000e+00> : vector<16x256xf32>
    %52 = tpu.matmul %49, %51, %cst_36 {dimension_numbers = #tpu.dot_dimension_numbers<[1], [0], [0], [1], [0, 0, 1, 1], [], []>} : vector<16x128xbf16>, vector<128x256xbf16>, vector<16x256xf32> -> vector<16x256xf32>
    %c0_37 = arith.constant 0 : index
    %c0_38 = arith.constant 0 : index
    %c0_39 = arith.constant 0 : index
    %53 = vector.load %arg11[%c0_37, %c0_38, %c0_39] : memref<1x1x256xf32, #tpu.memory_space<vmem>>, vector<1x1x256xf32>
    %54 = vector.shape_cast %53 : vector<1x1x256xf32> to vector<1x256xf32>
    %55 = vector.broadcast %54 : vector<1x256xf32> to vector<16x256xf32>
    %56 = arith.addf %52, %55 : vector<16x256xf32>
    %c2_i32 = arith.constant 2 : i32
    %57 = arith.cmpi slt, %arg1, %c2_i32 : i32
    %58 = arith.extui %57 : i1 to i32
    %c0_i32_40 = arith.constant 0 : i32
    %59 = arith.cmpi ne, %58, %c0_i32_40 : i32
    scf.if %59 {
      %c8_43 = arith.constant 8 : index
      %c0_44 = arith.constant 0 : index
      %63 = vector.load %arg17[%c8_43, %c0_44] : memref<26x128xf32, #tpu.memory_space<vmem>>, vector<16x128xf32>
      %64 = vector.extract_strided_slice %56 {offsets = [0, 0], sizes = [16, 128], strides = [1, 1]} : vector<16x256xf32> to vector<16x128xf32>
      %65 = arith.addf %63, %64 : vector<16x128xf32>
      %66 = vector.broadcast %1 : vector<16x1xf32> to vector<16x128xf32>
      %67 = arith.mulf %65, %66 : vector<16x128xf32>
      %c8_45 = arith.constant 8 : index
      %c0_46 = arith.constant 0 : index
      %68 = vector.load %arg17[%c8_45, %c0_46] : memref<26x128xf32, #tpu.memory_space<vmem>>, vector<16x128xf32>
      tpu.vector_store %arg17[%c8_45, %c0_46], %67 {strides = array<i32>} : memref<26x128xf32, #tpu.memory_space<vmem>>, vector<16x128xf32>,
      %c0_47 = arith.constant 0 : index
      %c0_48 = arith.constant 0 : index
      %69 = vector.load %arg18[%c0_47, %c0_48] : memref<16x128xf32, #tpu.memory_space<vmem>>, vector<16x128xf32>
      %70 = vector.extract_strided_slice %56 {offsets = [0, 128], sizes = [16, 128], strides = [1, 1]} : vector<16x256xf32> to vector<16x128xf32>
      %71 = arith.addf %69, %70 : vector<16x128xf32>
      %c0_49 = arith.constant 0 : index
      %c0_50 = arith.constant 0 : index
      %72 = vector.load %arg18[%c0_49, %c0_50] : memref<16x128xf32, #tpu.memory_space<vmem>>, vector<16x128xf32>
      tpu.vector_store %arg18[%c0_49, %c0_50], %71 {strides = array<i32>} : memref<16x128xf32, #tpu.memory_space<vmem>>, vector<16x128xf32>,
    } else {
    }
    %c2_i32_41 = arith.constant 2 : i32
    %60 = arith.cmpi eq, %arg1, %c2_i32_41 : i32
    %61 = arith.extui %60 : i1 to i32
    %c0_i32_42 = arith.constant 0 : i32
    %62 = arith.cmpi ne, %61, %c0_i32_42 : i32
    scf.if %62 {
      %c0_43 = arith.constant 0 : index
      %c0_44 = arith.constant 0 : index
      %63 = vector.load %arg18[%c0_43, %c0_44] : memref<16x128xf32, #tpu.memory_space<vmem>>, vector<16x128xf32>
      %64 = vector.extract_strided_slice %56 {offsets = [0, 128], sizes = [16, 128], strides = [1, 1]} : vector<16x256xf32> to vector<16x128xf32>
      %65 = arith.addf %63, %64 : vector<16x128xf32>
      %66 = vector.broadcast %1 : vector<16x1xf32> to vector<16x128xf32>
      %67 = arith.mulf %65, %66 : vector<16x128xf32>
      %68 = arith.truncf %67 : vector<16x128xf32> to vector<16x128xbf16>
      %c0_45 = arith.constant 0 : index
      %c0_46 = arith.constant 0 : index
      %69 = vector.load %arg12[%c0_45, %c0_46] : memref<128x256xbf16, #tpu.memory_space<vmem>>, vector<128x256xbf16>
      %cst_47 = arith.constant dense<0.000000e+00> : vector<16x256xf32>
      %70 = tpu.matmul %68, %69, %cst_47 {dimension_numbers = #tpu.dot_dimension_numbers<[1], [0], [0], [1], [0, 0, 1, 1], [], []>} : vector<16x128xbf16>, vector<128x256xbf16>, vector<16x256xf32> -> vector<16x256xf32>
      %c0_48 = arith.constant 0 : index
      %c0_49 = arith.constant 0 : index
      %71 = vector.load %arg13[%c0_48, %c0_49] : memref<1x256xf32, #tpu.memory_space<vmem>>, vector<1x256xf32>
      %72 = vector.broadcast %71 : vector<1x256xf32> to vector<16x256xf32>
      %73 = arith.addf %70, %72 : vector<16x256xf32>
      %74 = vector.extract_strided_slice %73 {offsets = [0, 0], sizes = [16, 128], strides = [1, 1]} : vector<16x256xf32> to vector<16x128xf32>
      %75 = vector.broadcast %1 : vector<16x1xf32> to vector<16x128xf32>
      %76 = arith.mulf %74, %75 : vector<16x128xf32>
      %77 = vector.extract_strided_slice %73 {offsets = [0, 128], sizes = [16, 128], strides = [1, 1]} : vector<16x256xf32> to vector<16x128xf32>
      %78 = vector.broadcast %1 : vector<16x1xf32> to vector<16x128xf32>
      %79 = arith.mulf %77, %78 : vector<16x128xf32>
      %80 = math.exp %79 : vector<16x128xf32>
      %c0_50 = arith.constant 0 : index
      %c0_51 = arith.constant 0 : index
      %c0_52 = arith.constant 0 : index
      %81 = vector.load %arg5[%c0_50, %c0_51, %c0_52] : memref<1x16x128xf32, #tpu.memory_space<vmem>>, vector<1x16x128xf32>
      %82 = vector.shape_cast %81 : vector<1x16x128xf32> to vector<16x128xf32>
      %83 = arith.mulf %80, %82 : vector<16x128xf32>
      %84 = arith.addf %76, %83 : vector<16x128xf32>
      %85 = vector.broadcast %1 : vector<16x1xf32> to vector<16x128xf32>
      %86 = arith.mulf %84, %85 : vector<16x128xf32>
      %c0_53 = arith.constant 0 : index
      %c0_54 = arith.constant 0 : index
      %c0_55 = arith.constant 0 : index
      %87 = vector.load %arg14[%c0_53, %c0_54, %c0_55] : memref<1x16x128xf32, #tpu.memory_space<vmem>>, vector<1x16x128xf32>
      %88 = vector.shape_cast %87 : vector<1x16x128xf32> to vector<16x128xf32>
      %89 = vector.shape_cast %86 : vector<16x128xf32> to vector<1x16x128xf32>
      tpu.vector_store %arg14[%c0_53, %c0_54, %c0_55], %89 {strides = array<i32>} : memref<1x16x128xf32, #tpu.memory_space<vmem>>, vector<1x16x128xf32>,
      %c0_56 = arith.constant 0 : index
      %c0_57 = arith.constant 0 : index
      %c0_58 = arith.constant 0 : index
      %90 = vector.load %arg15[%c0_56, %c0_57, %c0_58] : memref<1x16x128xf32, #tpu.memory_space<vmem>>, vector<1x16x128xf32>
      %91 = vector.shape_cast %90 : vector<1x16x128xf32> to vector<16x128xf32>
      %92 = vector.shape_cast %76 : vector<16x128xf32> to vector<1x16x128xf32>
      tpu.vector_store %arg15[%c0_56, %c0_57, %c0_58], %92 {strides = array<i32>} : memref<1x16x128xf32, #tpu.memory_space<vmem>>, vector<1x16x128xf32>,
      %c0_59 = arith.constant 0 : index
      %c0_60 = arith.constant 0 : index
      %c0_61 = arith.constant 0 : index
      %93 = vector.load %arg16[%c0_59, %c0_60, %c0_61] : memref<1x16x128xf32, #tpu.memory_space<vmem>>, vector<1x16x128xf32>
      %94 = vector.shape_cast %93 : vector<1x16x128xf32> to vector<16x128xf32>
      %95 = vector.shape_cast %79 : vector<16x128xf32> to vector<1x16x128xf32>
      tpu.vector_store %arg16[%c0_59, %c0_60, %c0_61], %95 {strides = array<i32>} : memref<1x16x128xf32, #tpu.memory_space<vmem>>, vector<1x16x128xf32>,
    } else {
    }
    return
  }
  func.func @transform_0(%arg0: i32, %arg1: i32, %arg2: memref<3xi32, #tpu.memory_space<smem>>) -> (i32, i32, i32) {
    %c0_i32 = arith.constant 0 : i32
    %c0_i32_0 = arith.constant 0 : i32
    %c0_i32_1 = arith.constant 0 : i32
    return %arg0, %c0_i32, %c0_i32_0 : i32, i32, i32
  }
  func.func @transform_1(%arg0: i32, %arg1: i32, %arg2: memref<3xi32, #tpu.memory_space<smem>>) -> (i32, i32, i32) {
    %c0_i32 = arith.constant 0 : i32
    %c0_i32_0 = arith.constant 0 : i32
    %c0_i32_1 = arith.constant 0 : i32
    return %arg0, %c0_i32, %c0_i32_0 : i32, i32, i32
  }
  func.func @transform_2(%arg0: i32, %arg1: i32, %arg2: memref<3xi32, #tpu.memory_space<smem>>) -> (i32, i32, i32) {
    %c0_i32 = arith.constant 0 : i32
    %c0_i32_0 = arith.constant 0 : i32
    %c0_i32_1 = arith.constant 0 : i32
    return %arg0, %c0_i32, %c0_i32_0 : i32, i32, i32
  }
  func.func @transform_3(%arg0: i32, %arg1: i32, %arg2: memref<3xi32, #tpu.memory_space<smem>>) -> (i32, i32) {
    %c0_i32 = arith.constant 0 : i32
    %c0_i32_0 = arith.constant 0 : i32
    %c0_i32_1 = arith.constant 0 : i32
    return %c0_i32, %c0_i32_0 : i32, i32
  }
  func.func @transform_4(%arg0: i32, %arg1: i32, %arg2: memref<3xi32, #tpu.memory_space<smem>>) -> (i32, i32) {
    %c0_i32 = arith.constant 0 : i32
    %c0_i32_0 = arith.constant 0 : i32
    %c0_i32_1 = arith.constant 0 : i32
    return %c0_i32, %c0_i32_0 : i32, i32
  }
  func.func @transform_5(%arg0: i32, %arg1: i32, %arg2: memref<3xi32, #tpu.memory_space<smem>>) -> (i32, i32, i32, i32) {
    %c0_i32 = arith.constant 0 : i32
    %c0_i32_0 = arith.constant 0 : i32
    %c0_i32_1 = arith.constant 0 : i32
    %c0_i32_2 = arith.constant 0 : i32
    return %arg1, %c0_i32, %c0_i32_0, %c0_i32_1 : i32, i32, i32, i32
  }
  func.func @transform_6(%arg0: i32, %arg1: i32, %arg2: memref<3xi32, #tpu.memory_space<smem>>) -> (i32, i32, i32) {
    %c0_i32 = arith.constant 0 : i32
    %c0_i32_0 = arith.constant 0 : i32
    %c0_i32_1 = arith.constant 0 : i32
    return %arg1, %c0_i32, %c0_i32_0 : i32, i32, i32
  }
  func.func @transform_7(%arg0: i32, %arg1: i32, %arg2: memref<3xi32, #tpu.memory_space<smem>>) -> (i32, i32, i32) {
    %c0_i32 = arith.constant 0 : i32
    %c0_i32_0 = arith.constant 0 : i32
    %c0_i32_1 = arith.constant 0 : i32
    return %arg1, %c0_i32, %c0_i32_0 : i32, i32, i32
  }
  func.func @transform_8(%arg0: i32, %arg1: i32, %arg2: memref<3xi32, #tpu.memory_space<smem>>) -> (i32, i32, i32) {
    %c0_i32 = arith.constant 0 : i32
    %c0_i32_0 = arith.constant 0 : i32
    %c0_i32_1 = arith.constant 0 : i32
    return %arg1, %c0_i32, %c0_i32_0 : i32, i32, i32
  }
  func.func @transform_9(%arg0: i32, %arg1: i32, %arg2: memref<3xi32, #tpu.memory_space<smem>>) -> (i32, i32) {
    %c0_i32 = arith.constant 0 : i32
    %c0_i32_0 = arith.constant 0 : i32
    %c0_i32_1 = arith.constant 0 : i32
    return %c0_i32, %c0_i32_0 : i32, i32
  }
  func.func @transform_10(%arg0: i32, %arg1: i32, %arg2: memref<3xi32, #tpu.memory_space<smem>>) -> (i32, i32) {
    %c0_i32 = arith.constant 0 : i32
    %c0_i32_0 = arith.constant 0 : i32
    %c0_i32_1 = arith.constant 0 : i32
    return %c0_i32, %c0_i32_0 : i32, i32
  }
  func.func @transform_11(%arg0: i32, %arg1: i32, %arg2: memref<3xi32, #tpu.memory_space<smem>>) -> (i32, i32, i32) {
    %c0_i32 = arith.constant 0 : i32
    %c0_i32_0 = arith.constant 0 : i32
    %c0_i32_1 = arith.constant 0 : i32
    return %arg0, %c0_i32, %c0_i32_0 : i32, i32, i32
  }
  func.func @transform_12(%arg0: i32, %arg1: i32, %arg2: memref<3xi32, #tpu.memory_space<smem>>) -> (i32, i32, i32) {
    %c0_i32 = arith.constant 0 : i32
    %c0_i32_0 = arith.constant 0 : i32
    %c0_i32_1 = arith.constant 0 : i32
    return %arg0, %c0_i32, %c0_i32_0 : i32, i32, i32
  }
  func.func @transform_13(%arg0: i32, %arg1: i32, %arg2: memref<3xi32, #tpu.memory_space<smem>>) -> (i32, i32, i32) {
    %c0_i32 = arith.constant 0 : i32
    %c0_i32_0 = arith.constant 0 : i32
    %c0_i32_1 = arith.constant 0 : i32
    return %arg0, %c0_i32, %c0_i32_0 : i32, i32, i32
  }
}

</mosaic_0001>

<bundles_post_ra>
// kernel: tpu_custom_call.1
= control target key start
LH: loop header
LB: loop body
LE: loop exit
PB: predicated region body
PF: predicated region fallthrough
CT: control target
= control target key end

     0   :  { %s3168_s16 = smov [#allocation5]   ;;  %s3812_s0 = inlined_call_operand.vmem [shape: s32[3], index: 0, kind: input, shape index: {}]   ;;  %s3813_s1 = inlined_call_operand.vmem [shape: f32[2,16,8], index: 1, kind: input, shape index: {}]   ;;  %s3814_s2 = inlined_call_operand.vmem [shape: f32[2,16,1], index: 2, kind: input, shape index: {}]   ;;  %s3815_s3 = inlined_call_operand.vmem [shape: f32[2,16,128], index: 3, kind: input, shape index: {}]   ;;  %s3816_s4 = inlined_call_operand.vmem [shape: bf16[8,128], index: 4, kind: input, shape index: {}]   ;;  %s3817_s5 = inlined_call_operand.vmem [shape: f32[1,128], index: 5, kind: input, shape index: {}]   ;;  %s3818_s6 = inlined_call_operand.hbm [shape: bf16[3,5,128,256], index: 6, kind: input, shape index: {}]   ;;  %s3819_s7 = inlined_call_operand.vmem [shape: f32[3,1,256], index: 7, kind: input, shape index: {}]   ;;  %s3820_s8 = inlined_call_operand.hbm [shape: bf16[3,128,256], index: 8, kind: input, shape index: {}]   ;;  %s3821_s9 = inlined_call_operand.vmem [shape: f32[3,1,256], index: 9, kind: input, shape index: {}]   ;;  %s3822_s10 = inlined_call_operand.hbm [shape: bf16[128,256], index: 10, kind: input, shape index: {}]   ;;  %s3823_s11 = inlined_call_operand.vmem [shape: f32[1,256], index: 11, kind: input, shape index: {}]   ;;  %s3824_s12 = inlined_call_operand.hbm [shape: f32[2,16,128], index: 12, kind: output, shape index: {0}]   ;;  %s3825_s13 = inlined_call_operand.hbm [shape: f32[2,16,128], index: 13, kind: output, shape index: {1}]   ;;  %s3826_s14 = inlined_call_operand.hbm [shape: f32[2,16,128], index: 14, kind: output, shape index: {2}]  }
   0x1   :  { %3846 = sst [smem:[#allocation32_spill]] %s3813_s1  ;;  %s21_s15 = sshll.u32 %s3812_s0, 4  ;;  %s22_s15 = int_to_ptr.vmem [resolvable:$true] %s21_s15 }
   0x2   :  { %3847 = sst [smem:[#allocation33_spill]] %s3815_s3 }
   0x3   :  { %3848 = sst [smem:[#allocation34_spill]] %s3816_s4 }
   0x4   :  { %3849 = sst [smem:[#allocation35_spill]] %s3817_s5 }
   0x5   :  { %3850 = sst [smem:[#allocation36_spill]] %s3819_s7 }
   0x6   :  { %3851 = sst [smem:[#allocation37_spill]] %s3821_s9 }
   0x7   :  { %3852 = sst [smem:[#allocation38_spill]] %s3822_s10 }
   0x8   :  { %3853 = sst [smem:[#allocation39_spill]] %s3823_s11 }
   0x9   :  { %3854 = sst [smem:[#allocation40_spill]] %s3824_s12 }
   0xa   :  { %3855 = sst [smem:[#allocation41_spill]] %s3825_s13 }
   0xb   :  { %3856 = sst [smem:[#allocation42_spill]] %s3826_s14 }
   0xc   :  { %24 = dma.vmem_to_smem %s22_s15, 16, %s3168_s16, [#allocation4] }
   0xd   :  { %3102 = dma.done.wait [#allocation4], 16 }
   0xe   :  { %3103 = vsyncadd [#allocation4], 4294967280 }
   0xf   :  { %27 = sfence }
  0x10   :  { %28 = vsyncpa [#allocation7], 0 }
  0x11   :  { %30 = vsyncpa [#allocation7 + $0x1], 0 }
  0x12   :  { %31 = vsyncpa [#allocation10], 0 }
  0x13   :  { %33 = vsyncpa [#allocation10 + $0x1], 0 }
  0x14   :  { %34 = vsyncpa [#allocation8], 0 }
  0x15   :  { %36 = vsyncpa [#allocation8 + $0x1], 0 }
  0x16   :  { %37 = vsyncpa [#allocation14], 0 }
  0x17   :  { %39 = vsyncpa [#allocation14 + $0x1], 0  ;;  %s3256_s17 = smov 0   ;;  %s3258_s18 = smov 0  }
  0x18   :  { %s3260_s19 = smov 0   ;;  %s3262_s0 = smov 0  }
  0x19   :  { %s3264_s20 = smov 0   ;;  %s3266_s21 = smov 0  }
  0x1a   :  { %s3268_s22 = smov 0   ;;  %s3270_s23 = smov 0  }
  0x1b   :  { %s3272_s24 = smov 0   ;;  %s3274_s25 = smov 0  }
  0x1c   :  { %s3276_s26 = smov 0  }
  0x1d LB: > { %3857 = sst [smem:[#allocation22_spill]] %s3126_s17  ;;  %s3310_s27 = sadd.s32 4294967295, %s3166_s26   ;;  %s3166_s26 = sphi %s3276_s26, %s45_s26   ;;  %s3162_s25 = sphi %s3274_s25, %s3898_s25   ;;  %s3158_s24 = sphi %s3272_s24, %s3904_s24   ;;  %s3154_s23 = sphi %s3270_s23, %s3896_s23   ;;  %s3150_s22 = sphi %s3268_s22, %s3903_s22   ;;  %s3146_s21 = sphi %s3266_s21, %s3895_s21   ;;  %s3142_s20 = sphi %s3264_s20, %s3902_s20   ;;  %s3138_s0 = sphi %s3262_s0, %s3901_s0   ;;  %s3134_s19 = sphi %s3260_s19, %s3893_s19   ;;  %s3130_s18 = sphi %s3258_s18, %s3900_s18   ;;  %s3126_s17 = sphi %s3256_s17, %s3899_s17  }
  0x1e   : > { %3858 = sst [smem:[#allocation23_spill]] %s3134_s19  ;;  %s3828_s28 = sadd.s32 4294967294, %s3166_s26  }
  0x1f   : > { %3859 = sst [smem:[#allocation24_spill]] %s3146_s21  ;;  %p197_p0 = scmp.ne.s32.totalorder %s3142_s20, %s3138_s0 }
  0x20   : > { %3860 = sst [smem:[#allocation25_spill]] %s3162_s25  ;;  %p198_p1 = scmp.eq.s32.totalorder %s3310_s27, 0 }
  0x21   : > { %p340_p2 = scmp.ne.s32.totalorder %s3134_s19, %s3130_s18  ;;  %p341_p4 = scmp.eq.s32.totalorder %s3310_s27, 5 }
  0x22   : > { %p3320_p3 = por %p198_p1, %p197_p0  ;;  %p346_p5 = scmp.ne.s32.totalorder %s3130_s18, %s3126_s17 }
  0x23   : > { %p347_p6 = scmp.eq.s32.totalorder %s3828_s28, 5  ;;  %p3329_p7 = por %p341_p4, %p340_p2 }
  0x24   : > { %p2043_p8 = scmp.ge.s32.totalorder %s3166_s26, 1  ;;  %p406_p10 = scmp.lt.s32.totalorder %s3166_s26, 7 }
  0x25   : > { %s3862_s15 = scalar_select %p3329_p7, 1, 0 }
  0x26   : > { %p3334_p9 = por %p347_p6, %p346_p5  ;;  %s3866_s10 = sld [smem:[#allocation38_spill]] }
  0x27   : > { %3863 = sst [smem:[#allocation26_spill]] %s3862_s15  ;;  %p3342_p11 = pnand %p2043_p8, %p406_p10 }
  0x28   : > { %s3864_s16 = scalar_select %p3334_p9, 1, 0 }
  0x29   : > { %p2729_p12 = pneg %p3342_p11  ;;  %s3833_s29 = smov 128  }
  0x2a   : > { %3865 = sst [smem:[#allocation27_spill]] %s3864_s16  ;;  %s3169_s16 = smov [#allocation11]  }
  0x2b   : > { %s425_s14 = sshll.u32 %s3169_s16, 4  ;;  %p2730_p13 = pnand %p2729_p12, %p198_p1  ;;  %s426_s14 = int_to_ptr.vmem [resolvable:$true] %s425_s14 }
  0x2c   : > { %s423_s17 = sshll.u32 %s3866_s10, 4  ;;  %s3835_s0 = smov 8   ;;  %s424_s17 = int_to_ptr.hbm [resolvable:$true] %s423_s17 }
  0x2d   : > { %2732 = dma.hbm_to_vmem [thread:$0]  (!%p2730_p13), %s424_s17, 2048, %s426_s14, [#allocation10], %s3833_s29, %s3833_s29, %s3835_s0  }
  0x2e   : > { %s54_s10 = sadd.s32 1, %s3158_s24  ;;  %s57_s12 = sadd.s32 1, %s3162_s25 }
  0x2f   : > { %p55_p0 = scmp.ge.s32.totalorder %s54_s10, 3  ;;  %s184_s13 = sadd.s32 1, %s3146_s21 }
  0x30   : > { %p191_p2 = scmp.ne.s32.totalorder %s3146_s21, %s3142_s20  ;;  %p192_p4 = scmp.eq.s32.totalorder %s3166_s26, 0 }
  0x31   : > { %s3906_s10 = smov (%p55_p0, %s54_s10), 0  ;;  %s3908_s12 = smov (!%p55_p0, %s57_s12), %s3162_s25 }
  0x32   : > { %3868 = sst [smem:[#allocation28_spill]] %s3906_s10  ;;  %s181_s16 = ssub.s32 %s3158_s24, %s3906_s10 }
  0x33   : > { %p59_p5 = scmp.ge.s32.totalorder %s3908_s12, 2  ;;  %p182_p6 = scmp.eq.s32.totalorder %s181_s16, 0 }
  0x34   : > { %p193_p8 = por %p192_p4, %p191_p2  ;;  %p2751_p10 = scmp.lt.s32.totalorder %s3166_s26, 6 }
  0x35   : > { %s3910_s12 = smov (%p59_p5, %s3908_s12), 0  ;;  %s466_s29 = sand.u32 1, %s3146_s21  }
  0x36   : > { %3869 = sst [smem:[#allocation29_spill]] %s3910_s12  ;;  %s327_s17 = ssub.s32 %s3162_s25, %s3910_s12 }
  0x37   : > { %s3368_s14 = scalar_select %p182_p6, %s3146_s21, %s184_s13  }
  0x38   : > { %p328_p12 = scmp.eq.s32.totalorder %s327_s17, 0  ;;  %s2712_s0 = smul.u32 640, %s466_s29 }
  0x39   : > { %3870 = sst [smem:[#allocation30_spill]] %s3368_s14  ;;  %p3373_p13 = pnand %p2751_p10, %p193_p8 }
  0x3a   : > { %s3872_s10 = sadd.s32 1, %s3134_s19  ;;  %s2713_s11 = smul.u32 640, %s3158_s24 }
  0x3b   : > { %s3380_s16 = scalar_select %p328_p12, %s3134_s19, %s3872_s10  }
  0x3c   : > { %s470_s5 = scalar_lea.vmem [#allocation6], %s2712_s0  ;;  %s475_s13 = scalar_lea.hbm %s3818_s6, %s2713_s11 }
  0x3d   : > { %3873 = sst [smem:[#allocation31_spill]] %s3380_s16  ;;  %s478_s4 = sshll.u32 %s470_s5, 4  ;;  %s479_s4 = int_to_ptr.vmem [resolvable:$true] %s478_s4 }
  0x3e   : > { %s476_s12 = sshll.u32 %s475_s13, 4  ;;  %s495_s17 = sand.u32 1, %s3166_s26   ;;  %s477_s12 = int_to_ptr.hbm [resolvable:$true] %s476_s12 }
  0x3f   : > { %s467_s25 = scalar_lea.sflag [#allocation7], %s466_s29  ;;  %s3874_s14 = smov 8  }
  0x40   : > { %s3875_s21 = smov 128   ;;  %s2047_s10 = sshll.u32 %s466_s29, 7 }
  0x41   : > { %2736 = dma.hbm_to_vmem [thread:$0]  (!%p3373_p13), %s477_s12, 10240, %s479_s4, %s467_s25, %s3875_s21, %s3875_s21, %s3874_s14  }
  0x42   : > { %s2593_s16 = sshll.u32 %s3158_s24, 7  ;;  %s499_s7 = scalar_lea.vmem [#allocation9], %s2047_s10 }
  0x43   : > { %s504_s5 = scalar_lea.hbm %s3820_s8, %s2593_s16  ;;  %s507_s9 = sshll.u32 %s499_s7, 4  ;;  %s508_s9 = int_to_ptr.vmem [resolvable:$true] %s507_s9 }
  0x44   : > { %s505_s3 = sshll.u32 %s504_s5, 4  ;;  %s496_s11 = scalar_lea.sflag [#allocation10], %s495_s17  ;;  %s506_s3 = int_to_ptr.hbm [resolvable:$true] %s505_s3 }
  0x45   : > { %2739 = dma.hbm_to_vmem [thread:$0]  (!%p3373_p13), %s506_s3, 2048, %s508_s9, %s496_s11, %s3875_s21, %s3875_s21, %s3874_s14  }
  0x46   : > { %526 = sbr.rel (%p3342_p11) target bundleno = 1125 (0x465), region = 64  ;;  %s528_s4 = sand.u32 (!%p3342_p11), 1, %s3142_s20  }
  0x47   : > { %s2714_s12 = smul.u32 (!%p3342_p11), 640, %s528_s4  ;;  %s529_s19 = scalar_lea.sflag (!%p3342_p11), [#allocation7], %s528_s4 }
  0x49   : > { %s3404_s25 = scalar_lea.vmem (!%p3342_p11), [#allocation6], %s2714_s12 }
  0x4b   : > { %3105 = dma.done.wait (%p3320_p3), %s529_s19, 10240  }
  0x4c   : > { %3107 = vsyncadd (%p3320_p3), %s529_s19, 4294957056  ;;  %s3845_s15 = sand.u32 1, %s3310_s27   ;;  %s2051_s3 = sshll.u32 %s528_s4, 7 }
  0x4d   : > { %s539_s21 = scalar_lea.sflag [#allocation10], %s3845_s15  ;;  %s3413_s28 = scalar_lea.vmem [#allocation9], %s2051_s3 }
  0x4e   : > { %3109 = dma.done.wait (%p3320_p3), %s539_s21, 2048  }
  0x4f   : > { %3111 = vsyncadd (%p3320_p3), %s539_s21, 4294965248 }
  0x50   : > { %3113 = dma.done.wait (%p198_p1), [#allocation10], 2048  }
  0x51   : > { %3115 = vsyncadd (%p198_p1), [#allocation10], 4294965248  ;;  %p629_p11 = scmp.lt.s32.totalorder %s3154_s23, 1  ;;  %s3844_s29 = sand.u32 1, %s3130_s18  }
  0x52   : > { %s2053_s14 = sshll.u32 %s3844_s29, 4  ;;  %p644_p0 = scmp.lt.s32.totalorder %s3150_s22, 2 }
  0x53   : > { %s630_s16 = scalar_select %p629_p11, %s3154_s23, 1 }
  0x54   : > { %s3876_s1 = sld [smem:[#allocation32_spill]]  ;;  %s3459_s9 = scalar_lea.vmem [#allocation15], %s2053_s14 }
  0x55   : > { %s2594_s30 = sshll.u32 %s630_s16, 4  ;;  %s3877_s4 = sld [smem:[#allocation33_spill]] }
  0x56   : > { %s638_s7 = scalar_lea.vmem %s3814_s2, %s2594_s30  ;;  %s3878_s29 = sld [smem:[#allocation36_spill]] }
  0x57   : > { %v3440_v0 = vld [vmem:[%s638_s7] sm:$0xff]  ;;  %v3442_v1 = vld [vmem:[%s638_s7 + $0x8] sm:$0xff]  ;;  %s645_s19 = scalar_select %p644_p0, %s3150_s22, 2 }
  0x58   : > { %s3879_s0 = sld [smem:[#allocation37_spill]]  ;;  %p2064_p1 = scmp.ne.s32.totalorder %s3150_s22, 0 }
  0x59   : > { %s2062_s3 = sshll.u32 %s645_s19, 1 }
  0x5a   : > { %s633_s10 = scalar_lea.vmem %s3876_s1, %s2594_s30  ;;  %s3455_s1 = scalar_lea.vmem [#allocation12], %s2053_s14 }
  0x5b   : > { %s3438_s12 = scalar_lea.vmem %s3877_s4, %s2594_s30  ;;  %s3457_s30 = scalar_lea.vmem [#allocation13], %s2053_s14 }
  0x5c   : > { %s3448_s13 = scalar_lea.vmem %s3878_s29, %s2062_s3  ;;  %658 = sbr.rel (%p2064_p1) target bundleno = 243 (0xf3), region = 80 }
  0x5d   : > { %s3880_s4 = sld [smem:[#allocation34_spill]] (!%p2064_p1) }
  0x5e   : > { %s3453_s5 = scalar_lea.vmem %s3879_s0, %s2062_s3  ;;  %s3881_s14 = sld [smem:[#allocation35_spill]] (!%p2064_p1) }
  0x61   : > { %vm673_vm0 = vcmask 1043456   ;;  %v661_v3 = vld [vmem:[%s633_s10] sm:$0xff]  ;;  %v662_v4 = vld [vmem:[%s633_s10 + $0x8] sm:$0xff]  ;;  %v3172_v5 = vmov 0.0   ;;  %vm669_vm1 = vcmask 64512   ;;  %v3173_v8 = vmov 0  }
  0x62   : > { %659 = vst [vmem:[#allocation2] sm:$0xff] %v3172_v5  ;;  %v663_v7 = vpack.c.bf16 %v662_v4, %v661_v3  ;;  %2852 = vset.pattern.permute.xlu0 %v3173_v8 }
  0x63   : > { %v664_v2 = vld [vmem:[%s3880_s4] sm:$0xf]  ;;  %660 = vst [vmem:[#allocation2 + $0x18] sm:$0x3] %v3172_v5  ;;  %693 = vperm.xlu0 %2852, %v3440_v0  }
  0x64   : > { %v675_v6 = vsel %vm673_vm0, %v664_v2, 0  ;;  %705 = vst [vmem:[#allocation3] sm:$0xff] %v3172_v5  ;;  %v2853_v9 = vld [vmem:[%s3881_s14] ss:$0 sm:$0xff] }
  0x65   : > { %684 = vmatpush.bf16.msra.mxu0 %v675_v6  ;;  %706 = vst [vmem:[#allocation3 + $0x8] sm:$0xff] %v3172_v5 }
  0x68   : > { %2065 = vmatmul.msk.bf16.vlgmr.msra.gmra.mxu0 %vm669_vm1, %v663_v7 }
  0x6b   : > { %698 = vperm.xlu0 %2852, %v3442_v1  }
  0xd5   : > { %v694_v10 = vpop.permute.xlu0 %693 }
  0xdd   : > { %v699_v16 = vpop.permute.xlu0 %698 }
  0xe5   : > { %v686_v11 = vpop.f32.mrf.mxu0 }
  0xe6   : > { %v687_v12 = vadd.f32 %v2853_v9, %v686_v11 }
  0xe8   : > { %v701_v13 = vmul.f32 %v694_v10, %v687_v12 }
  0xea   : > { %703 = vst [vmem:[#allocation2 + $0x8] sm:$0xff] %v701_v13 }
  0xed   : > { %v688_v14 = vpop.f32.mrf.mxu0 }
  0xee   : > { %v689_v15 = vadd.f32 %v2853_v9, %v688_v14 }
  0xf0   : > { %v702_v17 = vmul.f32 %v699_v16, %v689_v15 }
  0xf2   : > { %704 = vst [vmem:[#allocation2 + $0x10] sm:$0xff] %v702_v17 }
  0xf3 PF: > { %v2140_v18 = vld [vmem:[%s3404_s25 + $0xf0] sm:$0xf]  ;;  %v2628_v19 = vld [vmem:[%s3404_s25 + $0xf4] sm:$0xf0]  ;;  %v2627_v20 = vld [vmem:[%s3404_s25 + $0xf4] sm:$0xf] }
  0xf4   : > { %v2141_v21 = vor.u32 %v2628_v19, %v2140_v18  ;;  %v2142_v22 = vld [vmem:[%s3404_s25 + $0xf8] sm:$0xf0]  ;;  %v2611_v23 = vld [vmem:[%s3404_s25 + $0x74] sm:$0xf]  ;;  %v2132_v27 = vld [vmem:[%s3404_s25 + $0xe0] sm:$0xf] }
  0xf5   : > { %v2206_v24 = vld [vmem:[%s3404_s25 + $0x78] sm:$0xf0]  ;;  %v2145_v25 = vor.u32 %v2627_v20, %v2142_v22  ;;  %v2626_v28 = vld [vmem:[%s3404_s25 + $0xe4] sm:$0xf0]  ;;  %v2625_v29 = vld [vmem:[%s3404_s25 + $0xe4] sm:$0xf] }
  0xf6   : > { %v2209_v26 = vor.u32 %v2611_v23, %v2206_v24  ;;  %826 = vmatpush.bf16.msra.mxu0 %v2141_v21  ;;  %v2133_v30 = vor.u32 %v2626_v28, %v2132_v27  ;;  %v2134_v31 = vld [vmem:[%s3404_s25 + $0xe8] sm:$0xf0]  ;;  %v2609_v32 = vld [vmem:[%s3404_s25 + $0x64] sm:$0xf]  ;;  %v2124_v36 = vld [vmem:[%s3404_s25 + $0xd0] sm:$0xf] }
  0xf7   : > { %v2198_v33 = vld [vmem:[%s3404_s25 + $0x68] sm:$0xf0]  ;;  %840 = vmatpush.bf16.msra.mxu1 %v2145_v25  ;;  %v2137_v34 = vor.u32 %v2625_v29, %v2134_v31  ;;  %v2624_v37 = vld [vmem:[%s3404_s25 + $0xd4] sm:$0xf0]  ;;  %v2623_v38 = vld [vmem:[%s3404_s25 + $0xd4] sm:$0xf] }
  0xf8   : > { %948 = vmatpush.bf16.msra.mxu3 %v2209_v26  ;;  %v2201_v35 = vor.u32 %v2609_v32, %v2198_v33  ;;  %v2126_v39 = vld [vmem:[%s3404_s25 + $0xd8] sm:$0xf0]  ;;  %v2204_v40 = vld [vmem:[%s3404_s25 + $0x70] sm:$0xf]  ;;  %v2612_v41 = vld [vmem:[%s3404_s25 + $0x74] sm:$0xf0]  ;;  %v2125_v45 = vor.u32 %v2624_v37, %v2124_v36 }
  0xf9   : > { %v2205_v42 = vor.u32 %v2612_v41, %v2204_v40  ;;  %v2607_v43 = vld [vmem:[%s3404_s25 + $0x54] sm:$0xf]  ;;  %v2190_v44 = vld [vmem:[%s3404_s25 + $0x58] sm:$0xf0]  ;;  %v2116_v46 = vld [vmem:[%s3404_s25 + $0xc0] sm:$0xf]  ;;  %v2129_v48 = vor.u32 %v2623_v38, %v2126_v39 }
  0xfa   : > { %827 = vmatpush.bf16.msra.mxu0 %v2133_v30  ;;  %v2622_v47 = vld [vmem:[%s3404_s25 + $0xc4] sm:$0xf0]  ;;  %v2193_v49 = vor.u32 %v2607_v43, %v2190_v44  ;;  %v2621_v50 = vld [vmem:[%s3404_s25 + $0xc4] sm:$0xf]  ;;  %v2196_v51 = vld [vmem:[%s3404_s25 + $0x60] sm:$0xf] }
  0xfb   : > { %841 = vmatpush.bf16.msra.mxu1 %v2137_v34  ;;  %v2610_v52 = vld [vmem:[%s3404_s25 + $0x64] sm:$0xf0]  ;;  %934 = vmatpush.bf16.msra.mxu2 %v2205_v42  ;;  %v2118_v53 = vld [vmem:[%s3404_s25 + $0xc8] sm:$0xf0]  ;;  %v2605_v55 = vld [vmem:[%s3404_s25 + $0x44] sm:$0xf]  ;;  %v2117_v58 = vor.u32 %v2622_v47, %v2116_v46 }
  0xfc   : > { %949 = vmatpush.bf16.msra.mxu3 %v2201_v35  ;;  %v2197_v54 = vor.u32 %v2610_v52, %v2196_v51  ;;  %v2182_v56 = vld [vmem:[%s3404_s25 + $0x48] sm:$0xf0]  ;;  %v2188_v57 = vld [vmem:[%s3404_s25 + $0x50] sm:$0xf]  ;;  %v2608_v59 = vld [vmem:[%s3404_s25 + $0x54] sm:$0xf0]  ;;  %v2121_v60 = vor.u32 %v2621_v50, %v2118_v53 }
  0xfd   : > { %v2185_v61 = vor.u32 %v2605_v55, %v2182_v56  ;;  %v2108_v62 = vld [vmem:[%s3404_s25 + $0xb0] sm:$0xf]  ;;  %v2620_v63 = vld [vmem:[%s3404_s25 + $0xb4] sm:$0xf0]  ;;  %v2619_v2 = vld [vmem:[%s3404_s25 + $0xb4] sm:$0xf]  ;;  %v2189_v4 = vor.u32 %v2608_v59, %v2188_v57 }
  0xfe   : > { %828 = vmatpush.bf16.msra.mxu0 %v2125_v45  ;;  %v2110_v3 = vld [vmem:[%s3404_s25 + $0xb8] sm:$0xf0]  ;;  %v2603_v5 = vld [vmem:[%s3404_s25 + $0x34] sm:$0xf]  ;;  %v2180_v7 = vld [vmem:[%s3404_s25 + $0x40] sm:$0xf]  ;;  %v2109_v9 = vor.u32 %v2620_v63, %v2108_v62 }
  0xff   : > { %842 = vmatpush.bf16.msra.mxu1 %v2129_v48  ;;  %935 = vmatpush.bf16.msra.mxu2 %v2197_v54  ;;  %v2174_v6 = vld [vmem:[%s3404_s25 + $0x38] sm:$0xf0]  ;;  %v2606_v8 = vld [vmem:[%s3404_s25 + $0x44] sm:$0xf0]  ;;  %v2113_v10 = vor.u32 %v2619_v2, %v2110_v3  ;;  %v2100_v12 = vld [vmem:[%s3404_s25 + $0xa0] sm:$0xf] }
 0x100   : > { %950 = vmatpush.bf16.msra.mxu3 %v2193_v49  ;;  %v2177_v11 = vor.u32 %v2603_v5, %v2174_v6  ;;  %v2618_v13 = vld [vmem:[%s3404_s25 + $0xa4] sm:$0xf0]  ;;  %v2617_v14 = vld [vmem:[%s3404_s25 + $0xa4] sm:$0xf]  ;;  %v2102_v15 = vld [vmem:[%s3404_s25 + $0xa8] sm:$0xf0]  ;;  %v2181_v16 = vor.u32 %v2606_v8, %v2180_v7 }
 0x101   : > { %v2601_v17 = vld [vmem:[%s3404_s25 + $0x24] sm:$0xf]  ;;  %v2166_v18 = vld [vmem:[%s3404_s25 + $0x28] sm:$0xf0]  ;;  %v2172_v19 = vld [vmem:[%s3404_s25 + $0x30] sm:$0xf]  ;;  %v2101_v21 = vor.u32 %v2618_v13, %v2100_v12  ;;  %v2105_v22 = vor.u32 %v2617_v14, %v2102_v15 }
 0x102   : > { %829 = vmatpush.bf16.msra.mxu0 %v2117_v58  ;;  %v2604_v20 = vld [vmem:[%s3404_s25 + $0x34] sm:$0xf0]  ;;  %v2169_v23 = vor.u32 %v2601_v17, %v2166_v18  ;;  %v2092_v24 = vld [vmem:[%s3404_s25 + $0x90] sm:$0xf]  ;;  %v2615_v26 = vld [vmem:[%s3404_s25 + $0x94] sm:$0xf] }
 0x103   : > { %843 = vmatpush.bf16.msra.mxu1 %v2121_v60  ;;  %936 = vmatpush.bf16.msra.mxu2 %v2189_v4  ;;  %v2616_v25 = vld [vmem:[%s3404_s25 + $0x94] sm:$0xf0]  ;;  %v2094_v27 = vld [vmem:[%s3404_s25 + $0x98] sm:$0xf0]  ;;  %v2173_v28 = vor.u32 %v2604_v20, %v2172_v19  ;;  %v2599_v29 = vld [vmem:[%s3404_s25 + $0x14] sm:$0xf] }
 0x104   : > { %951 = vmatpush.bf16.msra.mxu3 %v2185_v61  ;;  %v2158_v30 = vld [vmem:[%s3404_s25 + $0x18] sm:$0xf0]  ;;  %v2164_v31 = vld [vmem:[%s3404_s25 + $0x20] sm:$0xf]  ;;  %v2602_v32 = vld [vmem:[%s3404_s25 + $0x24] sm:$0xf0]  ;;  %v2093_v33 = vor.u32 %v2616_v25, %v2092_v24  ;;  %v2097_v36 = vor.u32 %v2615_v26, %v2094_v27 }
 0x105   : > { %v2084_v34 = vld [vmem:[%s3404_s25 + $0x80] sm:$0xf]  ;;  %v2614_v35 = vld [vmem:[%s3404_s25 + $0x84] sm:$0xf0]  ;;  %v2161_v37 = vor.u32 %v2599_v29, %v2158_v30  ;;  %v2613_v38 = vld [vmem:[%s3404_s25 + $0x84] sm:$0xf]  ;;  %v2165_v41 = vor.u32 %v2602_v32, %v2164_v31 }
 0x106   : > { %830 = vmatpush.bf16.msra.mxu0 %v2109_v9  ;;  %v2086_v39 = vld [vmem:[%s3404_s25 + $0x88] sm:$0xf0]  ;;  %v2597_v40 = vld [vmem:[%s3404_s25 + $0x4] sm:$0xf]  ;;  %v2284_v43 = vld [vmem:[%s3404_s25 + $0x170] sm:$0xf]  ;;  %v2085_v48 = vor.u32 %v2614_v35, %v2084_v34 }
 0x107   : > { %844 = vmatpush.bf16.msra.mxu1 %v2113_v10  ;;  %937 = vmatpush.bf16.msra.mxu2 %v2181_v16  ;;  %v2150_v42 = vld [vmem:[%s3404_s25 + $0x8] sm:$0xf0]  ;;  %v2644_v44 = vld [vmem:[%s3404_s25 + $0x174] sm:$0xf0]  ;;  %v2643_v45 = vld [vmem:[%s3404_s25 + $0x174] sm:$0xf]  ;;  %v2089_v52 = vor.u32 %v2613_v38, %v2086_v39 }
 0x108   : > { %952 = vmatpush.bf16.msra.mxu3 %v2177_v11  ;;  %v2286_v46 = vld [vmem:[%s3404_s25 + $0x178] sm:$0xf0]  ;;  %v2659_v47 = vld [vmem:[%s3404_s25 + $0x1f4] sm:$0xf]  ;;  %v2156_v50 = vld [vmem:[%s3404_s25 + $0x10] sm:$0xf]  ;;  %v2153_v53 = vor.u32 %v2597_v40, %v2150_v42  ;;  %v2285_v57 = vor.u32 %v2644_v44, %v2284_v43 }
 0x109   : > { %v2366_v49 = vld [vmem:[%s3404_s25 + $0x1f8] sm:$0xf0]  ;;  %v2600_v51 = vld [vmem:[%s3404_s25 + $0x14] sm:$0xf0]  ;;  %v2276_v54 = vld [vmem:[%s3404_s25 + $0x160] sm:$0xf]  ;;  %v2289_v58 = vor.u32 %v2643_v45, %v2286_v46 }
 0x10a   : > { %831 = vmatpush.bf16.msra.mxu0 %v2101_v21  ;;  %v2642_v55 = vld [vmem:[%s3404_s25 + $0x164] sm:$0xf0]  ;;  %v2641_v56 = vld [vmem:[%s3404_s25 + $0x164] sm:$0xf]  ;;  %v2278_v59 = vld [vmem:[%s3404_s25 + $0x168] sm:$0xf0]  ;;  %v2369_v62 = vor.u32 %v2659_v47, %v2366_v49  ;;  %v2157_v63 = vor.u32 %v2600_v51, %v2156_v50 }
 0x10b   : > { %845 = vmatpush.bf16.msra.mxu1 %v2105_v22  ;;  %938 = vmatpush.bf16.msra.mxu2 %v2173_v28  ;;  %v2657_v60 = vld [vmem:[%s3404_s25 + $0x1e4] sm:$0xf]  ;;  %v2358_v61 = vld [vmem:[%s3404_s25 + $0x1e8] sm:$0xf0]  ;;  %v2148_v2 = vld [vmem:[%s3404_s25] sm:$0xf]  ;;  %v2277_v12 = vor.u32 %v2642_v55, %v2276_v54  ;;  %v2281_v13 = vor.u32 %v2641_v56, %v2278_v59 }
 0x10c   : > { %953 = vmatpush.bf16.msra.mxu3 %v2169_v23  ;;  %v2598_v3 = vld [vmem:[%s3404_s25 + $0x4] sm:$0xf0]  ;;  %v707_v4 = vld [vmem:[#allocation2 + $0x6] sm:$0xff]  ;;  %v708_v5 = vld [vmem:[#allocation2 + $0xe] sm:$0xff]  ;;  %v2361_v15 = vor.u32 %v2657_v60, %v2358_v61  ;;  %p2516_p3 = scmp.ge.s32.totalorder %s3150_s22, 2 }
 0x10d   : > { %v726_v6 = vld [vmem:[#allocation2 + $0x7] sm:$0xff]  ;;  %v727_v7 = vld [vmem:[#allocation2 + $0xf] sm:$0xff]  ;;  %v2364_v8 = vld [vmem:[%s3404_s25 + $0x1f0] sm:$0xf]  ;;  %v709_v10 = vpack.c.bf16 %v708_v5, %v707_v4  ;;  %v2149_v16 = vor.u32 %v2598_v3, %v2148_v2 }
 0x10e   : > { %832 = vmatpush.bf16.msra.mxu0 %v2093_v33  ;;  %v2660_v9 = vld [vmem:[%s3404_s25 + $0x1f4] sm:$0xf0]  ;;  %v728_v11 = vpack.c.bf16 %v727_v7, %v726_v6  ;;  %v2268_v14 = vld [vmem:[%s3404_s25 + $0x150] sm:$0xf]  ;;  %v2639_v18 = vld [vmem:[%s3404_s25 + $0x154] sm:$0xf] }
 0x10f   : > { %846 = vmatpush.bf16.msra.mxu1 %v2097_v36  ;;  %939 = vmatpush.bf16.msra.mxu2 %v2165_v41  ;;  %v2640_v17 = vld [vmem:[%s3404_s25 + $0x154] sm:$0xf0]  ;;  %v2270_v19 = vld [vmem:[%s3404_s25 + $0x158] sm:$0xf0]  ;;  %v2365_v20 = vor.u32 %v2660_v9, %v2364_v8  ;;  %v2655_v21 = vld [vmem:[%s3404_s25 + $0x1d4] sm:$0xf] }
 0x110   : > { %954 = vmatpush.bf16.msra.mxu3 %v2161_v37  ;;  %v2350_v22 = vld [vmem:[%s3404_s25 + $0x1d8] sm:$0xf0]  ;;  %v2356_v23 = vld [vmem:[%s3404_s25 + $0x1e0] sm:$0xf]  ;;  %v2658_v24 = vld [vmem:[%s3404_s25 + $0x1e4] sm:$0xf0]  ;;  %v2269_v25 = vor.u32 %v2640_v17, %v2268_v14  ;;  %v2273_v26 = vor.u32 %v2639_v18, %v2270_v19 }
 0x111   : > { %v2260_v27 = vld [vmem:[%s3404_s25 + $0x140] sm:$0xf]  ;;  %v2353_v28 = vor.u32 %v2655_v21, %v2350_v22  ;;  %v2638_v29 = vld [vmem:[%s3404_s25 + $0x144] sm:$0xf0]  ;;  %v2637_v30 = vld [vmem:[%s3404_s25 + $0x144] sm:$0xf]  ;;  %v2357_v32 = vor.u32 %v2658_v24, %v2356_v23 }
 0x112   : > { %833 = vmatpush.bf16.msra.mxu0 %v2085_v48  ;;  %v2262_v31 = vld [vmem:[%s3404_s25 + $0x148] sm:$0xf0]  ;;  %v2653_v33 = vld [vmem:[%s3404_s25 + $0x1c4] sm:$0xf]  ;;  %v2348_v35 = vld [vmem:[%s3404_s25 + $0x1d0] sm:$0xf]  ;;  %v2261_v37 = vor.u32 %v2638_v29, %v2260_v27 }
 0x113   : > { %847 = vmatpush.bf16.msra.mxu1 %v2089_v52  ;;  %940 = vmatpush.bf16.msra.mxu2 %v2157_v63  ;;  %v2342_v34 = vld [vmem:[%s3404_s25 + $0x1c8] sm:$0xf0]  ;;  %v2656_v36 = vld [vmem:[%s3404_s25 + $0x1d4] sm:$0xf0]  ;;  %v2265_v38 = vor.u32 %v2637_v30, %v2262_v31  ;;  %v2252_v39 = vld [vmem:[%s3404_s25 + $0x130] sm:$0xf] }
 0x114   : > { %955 = vmatpush.bf16.msra.mxu3 %v2153_v53  ;;  %v2345_v40 = vor.u32 %v2653_v33, %v2342_v34  ;;  %v2636_v41 = vld [vmem:[%s3404_s25 + $0x134] sm:$0xf0]  ;;  %v2635_v42 = vld [vmem:[%s3404_s25 + $0x134] sm:$0xf]  ;;  %v2254_v43 = vld [vmem:[%s3404_s25 + $0x138] sm:$0xf0]  ;;  %v2349_v44 = vor.u32 %v2656_v36, %v2348_v35 }
 0x115   : > { %834 = vmatmul.bf16.vlgmr.msra.gmra.mxu0 %v728_v11  ;;  %v2651_v45 = vld [vmem:[%s3404_s25 + $0x1b4] sm:$0xf]  ;;  %v2334_v46 = vld [vmem:[%s3404_s25 + $0x1b8] sm:$0xf0]  ;;  %v2340_v47 = vld [vmem:[%s3404_s25 + $0x1c0] sm:$0xf]  ;;  %v2253_v49 = vor.u32 %v2636_v41, %v2252_v39  ;;  %v2257_v50 = vor.u32 %v2635_v42, %v2254_v43 }
 0x116   : > { %1062 = vmatpush.bf16.msrb.mxu0 %v2285_v57  ;;  %848 = vmatmul.bf16.vlgmr.msra.gmra.mxu1 %v728_v11  ;;  %v2654_v48 = vld [vmem:[%s3404_s25 + $0x1c4] sm:$0xf0]  ;;  %v2244_v51 = vld [vmem:[%s3404_s25 + $0x120] sm:$0xf]  ;;  %v2337_v52 = vor.u32 %v2651_v45, %v2334_v46  ;;  %v2633_v54 = vld [vmem:[%s3404_s25 + $0x124] sm:$0xf] }
 0x117   : > { %1076 = vmatpush.bf16.msrb.mxu1 %v2289_v58  ;;  %956 = vmatmul.bf16.vlgmr.msra.gmra.mxu3 %v709_v10  ;;  %v2634_v53 = vld [vmem:[%s3404_s25 + $0x124] sm:$0xf0]  ;;  %v2246_v55 = vld [vmem:[%s3404_s25 + $0x128] sm:$0xf0]  ;;  %v2341_v56 = vor.u32 %v2654_v48, %v2340_v47  ;;  %v2649_v57 = vld [vmem:[%s3404_s25 + $0x1a4] sm:$0xf] }
 0x118   : > { %1208 = vmatpush.bf16.msrb.mxu3 %v2369_v62  ;;  %941 = vmatpush.bf16.msra.mxu2 %v2149_v16  ;;  %v2326_v58 = vld [vmem:[%s3404_s25 + $0x1a8] sm:$0xf0]  ;;  %v2332_v59 = vld [vmem:[%s3404_s25 + $0x1b0] sm:$0xf]  ;;  %v2652_v60 = vld [vmem:[%s3404_s25 + $0x1b4] sm:$0xf0]  ;;  %v2245_v61 = vor.u32 %v2634_v53, %v2244_v51  ;;  %v2249_v62 = vor.u32 %v2633_v54, %v2246_v55 }
 0x119   : > { %v2236_v63 = vld [vmem:[%s3404_s25 + $0x110] sm:$0xf]  ;;  %v2329_v2 = vor.u32 %v2649_v57, %v2326_v58  ;;  %v2632_v3 = vld [vmem:[%s3404_s25 + $0x114] sm:$0xf0]  ;;  %v2631_v4 = vld [vmem:[%s3404_s25 + $0x114] sm:$0xf]  ;;  %v2333_v6 = vor.u32 %v2652_v60, %v2332_v59 }
 0x11a   : > { %1063 = vmatpush.bf16.msrb.mxu0 %v2277_v12  ;;  %v2238_v5 = vld [vmem:[%s3404_s25 + $0x118] sm:$0xf0]  ;;  %v2647_v7 = vld [vmem:[%s3404_s25 + $0x194] sm:$0xf]  ;;  %v2324_v9 = vld [vmem:[%s3404_s25 + $0x1a0] sm:$0xf]  ;;  %v2237_v11 = vor.u32 %v2632_v3, %v2236_v63 }
 0x11b   : > { %1077 = vmatpush.bf16.msrb.mxu1 %v2281_v13  ;;  %942 = vmatmul.bf16.vlgmr.msra.gmra.mxu2 %v709_v10  ;;  %v2318_v8 = vld [vmem:[%s3404_s25 + $0x198] sm:$0xf0]  ;;  %v2650_v10 = vld [vmem:[%s3404_s25 + $0x1a4] sm:$0xf0]  ;;  %v2241_v12 = vor.u32 %v2631_v4, %v2238_v5  ;;  %v2228_v13 = vld [vmem:[%s3404_s25 + $0x100] sm:$0xf] }
 0x11c   : > { %1209 = vmatpush.bf16.msrb.mxu3 %v2361_v15  ;;  %1194 = vmatpush.bf16.msrb.mxu2 %v2365_v20  ;;  %v2630_v14 = vld [vmem:[%s3404_s25 + $0x104] sm:$0xf0]  ;;  %v2629_v15 = vld [vmem:[%s3404_s25 + $0x104] sm:$0xf]  ;;  %v2321_v16 = vor.u32 %v2647_v7, %v2318_v8  ;;  %v2230_v17 = vld [vmem:[%s3404_s25 + $0x108] sm:$0xf0]  ;;  %v2325_v20 = vor.u32 %v2650_v10, %v2324_v9 }
 0x11d   : > { %v2645_v18 = vld [vmem:[%s3404_s25 + $0x184] sm:$0xf]  ;;  %v2310_v19 = vld [vmem:[%s3404_s25 + $0x188] sm:$0xf0]  ;;  %v2444_v21 = vld [vmem:[%s3404_s25 + $0x270] sm:$0xf]  ;;  %v2229_v27 = vor.u32 %v2630_v14, %v2228_v13 }
 0x11e   : > { %1064 = vmatpush.bf16.msrb.mxu0 %v2269_v25  ;;  %v2676_v22 = vld [vmem:[%s3404_s25 + $0x274] sm:$0xf0]  ;;  %v2675_v23 = vld [vmem:[%s3404_s25 + $0x274] sm:$0xf]  ;;  %v2446_v24 = vld [vmem:[%s3404_s25 + $0x278] sm:$0xf0]  ;;  %v2313_v31 = vor.u32 %v2645_v18, %v2310_v19 }
 0x11f   : > { %1078 = vmatpush.bf16.msrb.mxu1 %v2273_v26  ;;  %v2316_v25 = vld [vmem:[%s3404_s25 + $0x190] sm:$0xf]  ;;  %v2648_v26 = vld [vmem:[%s3404_s25 + $0x194] sm:$0xf0]  ;;  %v963_v30 = vld [vmem:[#allocation2 + $0x10] sm:$0xff]  ;;  %v2449_v35 = vor.u32 %v2675_v23, %v2446_v24 }
 0x120   : > { %1210 = vmatpush.bf16.msrb.mxu3 %v2353_v28  ;;  %1195 = vmatpush.bf16.msrb.mxu2 %v2357_v32  ;;  %v2233_v28 = vor.u32 %v2629_v15, %v2230_v17  ;;  %v962_v29 = vld [vmem:[#allocation2 + $0x8] sm:$0xff]  ;;  %v2445_v32 = vor.u32 %v2676_v22, %v2444_v21  ;;  %v1095_v34 = vld [vmem:[#allocation2 + $0x11] sm:$0xff]  ;;  %v2317_v36 = vor.u32 %v2648_v26, %v2316_v25  ;;  %v2438_v41 = vld [vmem:[%s3404_s25 + $0x268] sm:$0xf0] }
 0x121   : > { %v1094_v33 = vld [vmem:[#allocation2 + $0x9] sm:$0xff]  ;;  %v2673_v39 = vld [vmem:[%s3404_s25 + $0x264] sm:$0xf]  ;;  %v2646_v43 = vld [vmem:[%s3404_s25 + $0x184] sm:$0xf0] }
 0x122   : > { %1065 = vmatpush.bf16.msrb.mxu0 %v2261_v37  ;;  %v2436_v37 = vld [vmem:[%s3404_s25 + $0x260] sm:$0xf]  ;;  %v2441_v46 = vor.u32 %v2673_v39, %v2438_v41  ;;  %v2428_v48 = vld [vmem:[%s3404_s25 + $0x250] sm:$0xf]  ;;  %v2430_v51 = vld [vmem:[%s3404_s25 + $0x258] sm:$0xf0] }
 0x123   : > { %1079 = vmatpush.bf16.msrb.mxu1 %v2265_v38  ;;  %v2674_v38 = vld [vmem:[%s3404_s25 + $0x264] sm:$0xf0]  ;;  %v2308_v42 = vld [vmem:[%s3404_s25 + $0x180] sm:$0xf]  ;;  %v2422_v57 = vld [vmem:[%s3404_s25 + $0x248] sm:$0xf0] }
 0x124   : > { %1211 = vmatpush.bf16.msrb.mxu3 %v2345_v40  ;;  %1196 = vmatpush.bf16.msrb.mxu2 %v2349_v44  ;;  %v964_v40 = vpack.c.bf16 %v963_v30, %v962_v29  ;;  %v1096_v44 = vpack.c.bf16 %v1095_v34, %v1094_v33  ;;  %v2437_v45 = vor.u32 %v2674_v38, %v2436_v37  ;;  %v2420_v54 = vld [vmem:[%s3404_s25 + $0x240] sm:$0xf]  ;;  %v2670_v55 = vld [vmem:[%s3404_s25 + $0x244] sm:$0xf0]  ;;  %v2412_v60 = vld [vmem:[%s3404_s25 + $0x230] sm:$0xf] }
 0x125   : > { %v2309_v47 = vor.u32 %v2646_v43, %v2308_v42  ;;  %v2421_v58 = vor.u32 %v2670_v55, %v2420_v54  ;;  %v2414_v63 = vld [vmem:[%s3404_s25 + $0x238] sm:$0xf0]  ;;  %v2404_v4 = vld [vmem:[%s3404_s25 + $0x220] sm:$0xf]  ;;  %v2666_v5 = vld [vmem:[%s3404_s25 + $0x224] sm:$0xf0] }
 0x126   : > { %1066 = vmatpush.bf16.msrb.mxu0 %v2253_v49  ;;  %v2672_v49 = vld [vmem:[%s3404_s25 + $0x254] sm:$0xf0]  ;;  %v2406_v7 = vld [vmem:[%s3404_s25 + $0x228] sm:$0xf0]  ;;  %v2405_v8 = vor.u32 %v2666_v5, %v2404_v4  ;;  %v2396_v10 = vld [vmem:[%s3404_s25 + $0x210] sm:$0xf] }
 0x127   : > { %1080 = vmatpush.bf16.msrb.mxu1 %v2257_v50  ;;  %v2671_v50 = vld [vmem:[%s3404_s25 + $0x254] sm:$0xf]  ;;  %v2398_v13 = vld [vmem:[%s3404_s25 + $0x218] sm:$0xf0]  ;;  %v2662_v17 = vld [vmem:[%s3404_s25 + $0x204] sm:$0xf0] }
 0x128   : > { %1212 = vmatpush.bf16.msrb.mxu3 %v2337_v52  ;;  %1197 = vmatpush.bf16.msrb.mxu2 %v2341_v56  ;;  %v2429_v52 = vor.u32 %v2672_v49, %v2428_v48  ;;  %v2433_v53 = vor.u32 %v2671_v50, %v2430_v51  ;;  %v2669_v56 = vld [vmem:[%s3404_s25 + $0x244] sm:$0xf]  ;;  %v2390_v19 = vld [vmem:[%s3404_s25 + $0x208] sm:$0xf0]  ;;  %v1226_v21 = vld [vmem:[#allocation2 + $0xa] sm:$0xff] }
 0x129   : > { %v2425_v59 = vor.u32 %v2669_v56, %v2422_v57  ;;  %v2661_v18 = vld [vmem:[%s3404_s25 + $0x204] sm:$0xf]  ;;  %v2510_v29 = vld [vmem:[%s3413_s28 + $0x70] sm:$0xf]  ;;  %v2692_v30 = vld [vmem:[%s3413_s28 + $0x74] sm:$0xf0] }
 0x12a   : > { %1067 = vmatpush.bf16.msrb.mxu0 %v2245_v61  ;;  %v2668_v61 = vld [vmem:[%s3404_s25 + $0x234] sm:$0xf0]  ;;  %v1227_v22 = vld [vmem:[#allocation2 + $0x12] sm:$0xff]  ;;  %v2393_v23 = vor.u32 %v2661_v18, %v2390_v19  ;;  %v2512_v33 = vld [vmem:[%s3413_s28 + $0x78] sm:$0xf0] }
 0x12b   : > { %1081 = vmatpush.bf16.msrb.mxu1 %v2249_v62  ;;  %v2667_v62 = vld [vmem:[%s3404_s25 + $0x234] sm:$0xf]  ;;  %v1228_v24 = vpack.c.bf16 %v1227_v22, %v1226_v21  ;;  %v2502_v37 = vld [vmem:[%s3413_s28 + $0x60] sm:$0xf]  ;;  %v2690_v38 = vld [vmem:[%s3413_s28 + $0x64] sm:$0xf0] }
 0x12c   : > { %1213 = vmatpush.bf16.msrb.mxu3 %v2329_v2  ;;  %1198 = vmatpush.bf16.msrb.mxu2 %v2333_v6  ;;  %v2413_v2 = vor.u32 %v2668_v61, %v2412_v60  ;;  %v2417_v3 = vor.u32 %v2667_v62, %v2414_v63  ;;  %v2665_v6 = vld [vmem:[%s3404_s25 + $0x224] sm:$0xf]  ;;  %v2503_v41 = vor.u32 %v2690_v38, %v2502_v37  ;;  %v2504_v42 = vld [vmem:[%s3413_s28 + $0x68] sm:$0xf0]  ;;  %v2496_v48 = vld [vmem:[%s3413_s28 + $0x58] sm:$0xf0] }
 0x12d   : > { %v2409_v9 = vor.u32 %v2665_v6, %v2406_v7  ;;  %v2689_v39 = vld [vmem:[%s3413_s28 + $0x64] sm:$0xf]  ;;  %v2486_v51 = vld [vmem:[%s3413_s28 + $0x40] sm:$0xf]  ;;  %v2488_v56 = vld [vmem:[%s3413_s28 + $0x48] sm:$0xf0] }
 0x12e   : > { %1068 = vmatpush.bf16.msrb.mxu0 %v2237_v11  ;;  %v2664_v11 = vld [vmem:[%s3404_s25 + $0x214] sm:$0xf0]  ;;  %v2507_v43 = vor.u32 %v2689_v39, %v2504_v42  ;;  %v3657_v61 = vld [vmem:[%s3448_s13] sm:$0x3]  ;;  %v2480_v4 = vld [vmem:[%s3413_s28 + $0x38] sm:$0xf0] }
 0x12f   : > { %1082 = vmatpush.bf16.msrb.mxu1 %v2241_v12  ;;  %v2663_v12 = vld [vmem:[%s3404_s25 + $0x214] sm:$0xf]  ;;  %v2397_v14 = vor.u32 %v2664_v11, %v2396_v10  ;;  %v2478_v62 = vld [vmem:[%s3413_s28 + $0x30] sm:$0xf]  ;;  %v2684_v63 = vld [vmem:[%s3413_s28 + $0x34] sm:$0xf0] }
 0x130   : > { %1214 = vmatpush.bf16.msrb.mxu3 %v2321_v16  ;;  %1199 = vmatpush.bf16.msrb.mxu2 %v2325_v20  ;;  %v2401_v15 = vor.u32 %v2663_v12, %v2398_v13  ;;  %v2388_v16 = vld [vmem:[%s3404_s25 + $0x200] sm:$0xf]  ;;  %v1361_v7 = vperm.slane %v3657_v61, 1  ;;  %v2682_v10 = vld [vmem:[%s3413_s28 + $0x24] sm:$0xf0] }
 0x131   : > { %v2389_v20 = vor.u32 %v2662_v17, %v2388_v16  ;;  %v2681_v11 = vld [vmem:[%s3413_s28 + $0x24] sm:$0xf]  ;;  %v2462_v18 = vld [vmem:[%s3413_s28 + $0x10] sm:$0xf]  ;;  %v2680_v19 = vld [vmem:[%s3413_s28 + $0x14] sm:$0xf0] }
 0x132   : > { %1069 = vmatpush.bf16.msrb.mxu0 %v2229_v27  ;;  %v2463_v21 = vor.u32 %v2680_v19, %v2462_v18  ;;  %v2464_v22 = vld [vmem:[%s3413_s28 + $0x18] sm:$0xf0] }
 0x133   : > { %1083 = vmatpush.bf16.msrb.mxu1 %v2233_v28 }
 0x134   : > { %1215 = vmatpush.bf16.msrb.mxu3 %v2313_v31  ;;  %1200 = vmatpush.bf16.msrb.mxu2 %v2317_v36  ;;  %v2691_v31 = vld [vmem:[%s3413_s28 + $0x74] sm:$0xf] }
 0x135   : > { %1070 = vmatmul.bf16.vlgmr.msrb.gmra.mxu0 %v964_v40  ;;  %v2515_v34 = vor.u32 %v2691_v31, %v2512_v33  ;;  %v2456_v33 = vld [vmem:[%s3413_s28 + $0x8] sm:$0xf0] }
 0x136   : > { %1326 = vmatpush.bf16.msra.mxu0 %v2445_v32  ;;  %1084 = vmatmul.bf16.vlgmr.msrb.gmra.mxu1 %v964_v40  ;;  %v2511_v32 = vor.u32 %v2692_v30, %v2510_v29  ;;  %v2454_v29 = vld [vmem:[%s3413_s28] sm:$0xf]  ;;  %v2678_v30 = vld [vmem:[%s3413_s28 + $0x4] sm:$0xf0] }
 0x137   : > { %1340 = vmatpush.bf16.msra.mxu1 %v2449_v35  ;;  %1216 = vmatmul.bf16.vlgmr.msrb.gmra.mxu3 %v1096_v44  ;;  %v2455_v37 = vor.u32 %v2678_v30, %v2454_v29 }
 0x138   : > { %1201 = vmatpush.bf16.msrb.mxu2 %v2309_v47  ;;  %1527 = vmatpush.bf16.msra.mxu3 %v2515_v34 }
 0x13a   : > { %1327 = vmatpush.bf16.msra.mxu0 %v2437_v45  ;;  %v2688_v45 = vld [vmem:[%s3413_s28 + $0x54] sm:$0xf0] }
 0x13b   : > { %1341 = vmatpush.bf16.msra.mxu1 %v2441_v46  ;;  %1202 = vmatmul.bf16.vlgmr.msrb.gmra.mxu2 %v1096_v44  ;;  %v2494_v44 = vld [vmem:[%s3413_s28 + $0x50] sm:$0xf]  ;;  %v2687_v46 = vld [vmem:[%s3413_s28 + $0x54] sm:$0xf] }
 0x13c   : > { %1513 = vmatpush.bf16.msra.mxu2 %v2511_v32  ;;  %1528 = vmatpush.bf16.msra.mxu3 %v2507_v43  ;;  %v2495_v47 = vor.u32 %v2688_v45, %v2494_v44  ;;  %v2499_v49 = vor.u32 %v2687_v46, %v2496_v48  ;;  %v2677_v32 = vld [vmem:[%s3413_s28 + $0x4] sm:$0xf] }
 0x13d   : > { %v2459_v39 = vor.u32 %v2677_v32, %v2456_v33 }
 0x13e   : > { %1328 = vmatpush.bf16.msra.mxu0 %v2429_v52  ;;  %v2686_v52 = vld [vmem:[%s3413_s28 + $0x44] sm:$0xf0] }
 0x13f   : > { %1342 = vmatpush.bf16.msra.mxu1 %v2433_v53  ;;  %v2685_v53 = vld [vmem:[%s3413_s28 + $0x44] sm:$0xf]  ;;  %v2487_v55 = vor.u32 %v2686_v52, %v2486_v51 }
 0x140   : > { %1514 = vmatpush.bf16.msra.mxu2 %v2503_v41  ;;  %1529 = vmatpush.bf16.msra.mxu3 %v2499_v49 }
 0x142   : > { %1329 = vmatpush.bf16.msra.mxu0 %v2421_v58 }
 0x143   : > { %1343 = vmatpush.bf16.msra.mxu1 %v2425_v59  ;;  %v2491_v59 = vor.u32 %v2685_v53, %v2488_v56 }
 0x144   : > { %1515 = vmatpush.bf16.msra.mxu2 %v2495_v47 }
 0x145   : > { %1530 = vmatpush.bf16.msra.mxu3 %v2491_v59 }
 0x146   : > { %1330 = vmatpush.bf16.msra.mxu0 %v2413_v2  ;;  %v2683_v2 = vld [vmem:[%s3413_s28 + $0x34] sm:$0xf] }
 0x147   : > { %1344 = vmatpush.bf16.msra.mxu1 %v2417_v3  ;;  %v2479_v3 = vor.u32 %v2684_v63, %v2478_v62  ;;  %v2483_v6 = vor.u32 %v2683_v2, %v2480_v4  ;;  %v1360_v63 = vperm.slane %v3657_v61, 0 }
 0x148   : > { %1516 = vmatpush.bf16.msra.mxu2 %v2487_v55 }
 0x149   : > { %1531 = vmatpush.bf16.msra.mxu3 %v2483_v6 }
 0x14a   : > { %1331 = vmatpush.bf16.msra.mxu0 %v2405_v8 }
 0x14b   : > { %1345 = vmatpush.bf16.msra.mxu1 %v2409_v9  ;;  %v2470_v9 = vld [vmem:[%s3413_s28 + $0x20] sm:$0xf] }
 0x14c   : > { %1517 = vmatpush.bf16.msra.mxu2 %v2479_v3  ;;  %v2471_v13 = vor.u32 %v2682_v10, %v2470_v9 }
 0x14e   : > { %1332 = vmatpush.bf16.msra.mxu0 %v2397_v14  ;;  %v2472_v14 = vld [vmem:[%s3413_s28 + $0x28] sm:$0xf0] }
 0x14f   : > { %1346 = vmatpush.bf16.msra.mxu1 %v2401_v15  ;;  %v2475_v17 = vor.u32 %v2681_v11, %v2472_v14 }
 0x150   : > { %1518 = vmatpush.bf16.msra.mxu2 %v2471_v13 }
 0x151   : > { %1532 = vmatpush.bf16.msra.mxu3 %v2475_v17 }
 0x152   : > { %1333 = vmatpush.bf16.msra.mxu0 %v2389_v20  ;;  %v2679_v20 = vld [vmem:[%s3413_s28 + $0x14] sm:$0xf] }
 0x153   : > { %1347 = vmatpush.bf16.msra.mxu1 %v2393_v23 }
 0x154   : > { %1519 = vmatpush.bf16.msra.mxu2 %v2463_v21 }
 0x155   : > { %1334 = vmatmul.bf16.vlgmr.msra.gmra.mxu0 %v1228_v24 }
 0x156   : > { %1348 = vmatmul.bf16.vlgmr.msra.gmra.mxu1 %v1228_v24 }
 0x158   : > { %1520 = vmatpush.bf16.msra.mxu2 %v2455_v37 }
 0x192   : > { %v3632_v27 = vpop.f32.mrf.mxu0 }
 0x193   : > { %v849_v25 = vpop.f32.mrf.mxu1 }
 0x19a   : > { %v957_v28 = vpop.f32.mrf.mxu3  ;;  %v3638_v36 = vpop.f32.mrf.mxu0 }
 0x19b   : > { %v3630_v26 = vpop.f32.mrf.mxu1  ;;  %v958_v57 = vadd.f32 %v957_v28, %v849_v25  ;;  %v2467_v28 = vor.u32 %v2679_v20, %v2464_v22 }
 0x19d   : > { %1533 = vmatpush.bf16.msra.mxu3 %v2467_v28 }
 0x19e   : > { %v3648_v50 = vpop.f32.mrf.mxu2 }
 0x19f   : > { %v944_v47 = vadd.f32 %v3648_v50, %v3632_v27 }
 0x1a1   : > { %1534 = vmatpush.bf16.msra.mxu3 %v2459_v39 }
 0x1a2   : > { %v959_v40 = vpop.f32.mrf.mxu3 }
 0x1a3   : > { %v960_v23 = vadd.f32 %v959_v40, %v3630_v26 }
 0x1a6   : > { %v945_v15 = vpop.f32.mrf.mxu2 }
 0x1a7   : > { %v946_v48 = vadd.f32 %v945_v15, %v3638_v36 }
 0x1b2   : > { %v3654_v58 = vpop.f32.mrf.mxu0 }
 0x1b3   : > { %v1085_v35 = vpop.f32.mrf.mxu1  ;;  %v1090_v49 = vadd.f32 %v3654_v58, %v944_v47 }
 0x1b4   : > { %v1091_v5 = vadd.f32 %v1085_v35, %v958_v57 }
 0x1ba   : > { %v1217_v60 = vpop.f32.mrf.mxu3  ;;  %v1073_v24 = vpop.f32.mrf.mxu0 }
 0x1bb   : > { %v1087_v54 = vpop.f32.mrf.mxu1  ;;  %v1223_v8 = vadd.f32 %v1217_v60, %v1091_v5  ;;  %v1092_v51 = vadd.f32 %v1073_v24, %v946_v48 }
 0x1bc   : > { %v1093_v34 = vadd.f32 %v1087_v54, %v960_v23  ;;  %v1427_v23 = vld [vmem:[%s3453_s5] sm:$0x3] }
 0x1bd   : > { %v1429_v24 = vperm.slane %v1427_v23, 0 }
 0x1be   : > { %v1203_v26 = vpop.f32.mrf.mxu2 }
 0x1bf   : > { %v1222_v56 = vadd.f32 %v1203_v26, %v1090_v49 }
 0x1c2   : > { %v1219_v31 = vpop.f32.mrf.mxu3 }
 0x1c3   : > { %v1225_v38 = vadd.f32 %v1219_v31, %v1093_v34 }
 0x1c6   : > { %v1205_v53 = vpop.f32.mrf.mxu2 }
 0x1c7   : > { %v1224_v60 = vadd.f32 %v1205_v53, %v1092_v51 }
 0x1d2   : > { %v1335_v44 = vpop.f32.mrf.mxu0 }
 0x1d3   : > { %v1349_v12 = vpop.f32.mrf.mxu1  ;;  %v1354_v62 = vadd.f32 %v1335_v44, %v1222_v56 }
 0x1d4   : > { %v1355_v16 = vadd.f32 %v1349_v12, %v1223_v8 }
 0x1d5   : > { %v1364_v36 = vadd.f32 %v1360_v63, %v1354_v62 }
 0x1d6   : > { %v1365_v25 = vadd.f32 %v1361_v7, %v1355_v16 }
 0x1d8   : > { %v2450_v35 = vmul.f32 -1.442695, %v1365_v25  ;;  %v1430_v25 = vperm.slane %v1427_v23, 1 }
 0x1da   : > { %2854 = vpow2.f32 %v2450_v35  ;;  %v1337_v59 = vpop.f32.mrf.mxu0 }
 0x1db   : > { %v1351_v41 = vpop.f32.mrf.mxu1  ;;  %v1356_v50 = vadd.f32 %v1337_v59, %v1224_v60 }
 0x1dc   : > { %v1357_v42 = vadd.f32 %v1351_v41, %v1225_v38 }
 0x1dd   : > { %v1366_v4 = vadd.f32 %v1360_v63, %v1356_v50 }
 0x1de   : > { %v1367_v40 = vadd.f32 %v1361_v7, %v1357_v42 }
 0x1e0   : > { %v2855_v43 = vpop.eup %2854  ;;  %v2451_v45 = vmul.f32 -1.442695, %v1367_v40 }
 0x1e1   : > { %v1376_v46 = vadd.f32 1.0, %v2855_v43 }
 0x1e2   : > { %2856 = vpow2.f32 %v2451_v45 }
 0x1e3   : > { %2858 = vrcp.f32 %v1376_v46  ;;  %v1389_v6 = vand.u32 2147483648, %v1376_v46  ;;  %vm1383_vm3 = vweird.f32 %v1376_v46  ;;  %v1387_v8 = vand.u32 2147483647, %v1376_v46 }
 0x1e5   : > { %v1390_v12 = vor.u32 1.1754944e-38, %v1389_v6  ;;  %vm1388_vm6 = vcmp.eq.f32.partialorder %v1387_v8, 8.507059e+37 }
 0x1e8   : > { %v2857_v52 = vpop.eup %2856 }
 0x1e9   : > { %v2859_v54 = vpop.eup %2858  ;;  %v1377_v55 = vadd.f32 1.0, %v2857_v52 }
 0x1ea   : > { %v1379_v57 = vmul.f32 %v2859_v54, %v1376_v46  ;;  %vm1384_vm2 = vweird.f32 %v2859_v54 }
 0x1eb   : > { %2860 = vrcp.f32 %v1377_v55  ;;  %vm1385_vm4 = vmor %vm1383_vm3, %vm1384_vm2  ;;  %v1404_v9 = vand.u32 2147483648, %v1377_v55  ;;  %v1402_v61 = vand.u32 2147483647, %v1377_v55  ;;  %vm1398_vm7 = vweird.f32 %v1377_v55 }
 0x1ec   : > { %v1380_v27 = vsub.f32 1.0, %v1379_v57  ;;  %2862 = vtanh.f32 %v1364_v36 }
 0x1ed   : > { %2864 = vtanh.f32 %v1366_v4  ;;  %v1405_v15 = vor.u32 1.1754944e-38, %v1404_v9  ;;  %vm1403_vm9 = vcmp.eq.f32.partialorder %v1402_v61, 8.507059e+37 }
 0x1ee   : > { %v1381_v2 = vmul.f32 %v2859_v54, %v1380_v27 }
 0x1f0   : > { %v1382_v5 = vadd.f32 %v2859_v54, %v1381_v2 }
 0x1f1   : > { %v2861_v3 = vpop.eup %2860 }
 0x1f2   : > { %v1394_v58 = vmul.f32 %v2861_v3, %v1377_v55  ;;  %v1386_v10 = vsel %vm1385_vm4, %v2859_v54, %v1382_v5  ;;  %vm1399_vm5 = vweird.f32 %v2861_v3  ;;  %v2863_v16 = vpop.eup %2862 }
 0x1f3   : > { %v1391_v14 = vsel %vm1388_vm6, %v1390_v12, %v1386_v10  ;;  %vm1400_vm8 = vmor %vm1398_vm7, %vm1399_vm5  ;;  %v2865_v18 = vpop.eup %2864 }
 0x1f4   : > { %v1395_v7 = vsub.f32 1.0, %v1394_v58  ;;  %v1408_v20 = vmul.f32 %v2863_v16, %v1391_v14 }
 0x1f6   : > { %v1396_v11 = vmul.f32 %v2861_v3, %v1395_v7 }
 0x1f8   : > { %v1397_v13 = vadd.f32 %v2861_v3, %v1396_v11 }
 0x1fa   : > { %v1401_v17 = vsel %vm1400_vm8, %v2861_v3, %v1397_v13 }
 0x1fb   : > { %v1406_v19 = vsel %vm1403_vm9, %v1405_v15, %v1401_v17 }
 0x1fc   : > { %v1409_v21 = vmul.f32 %v2865_v18, %v1406_v19 }
 0x1fe   : > { %v1410_v22 = vpack.c.bf16 %v1409_v21, %v1408_v20 }
 0x200   : > { %1521 = vmatmul.bf16.vlgmr.msra.gmra.mxu2 %v1410_v22  ;;  %1535 = vmatmul.bf16.vlgmr.msra.gmra.mxu3 %v1410_v22 }
 0x283   : > { %v1522_v28 = vpop.f32.mrf.mxu2  ;;  %v1536_v29 = vpop.f32.mrf.mxu3 }
 0x284   : > { %v1523_v30 = vadd.f32 %v1522_v28, %v1429_v24  ;;  %v3683_v31 = vadd.f32 %v1536_v29, %v1430_v25 }
 0x288   : > { %1544 = sbr.rel (%p2516_p3) target bundleno = 781 (0x30d), region = 84 }
 0x28b   : > { %v1524_v32 = vpop.f32.mrf.mxu2  ;;  %v1538_v33 = vpop.f32.mrf.mxu3 }
 0x28c   : > { %v1525_v34 = vadd.f32 %v1524_v32, %v1429_v24  ;;  %v3685_v35 = vadd.f32 %v1538_v33, %v1430_v25 }
 0x28d   : > { %v3174_v37 = vmov 0   ;;  %v1563_v38 = vld [vmem:[#allocation3] sm:$0xff]  ;;  %v1564_v39 = vld [vmem:[#allocation3 + $0x8] sm:$0xff]  ;;  %v1546_v45 = vld [vmem:[#allocation2 + $0x10] sm:$0xff] }
 0x28e   : > { %2866 = vset.pattern.permute.xlu0 %v3174_v37  ;;  %v1565_v41 = vadd.f32 %v1563_v38, %v3683_v31  ;;  %v1566_v42 = vadd.f32 %v1564_v39, %v3685_v35  ;;  %v1545_v26 = vld [vmem:[#allocation2 + $0x8] sm:$0xff]  ;;  %v1548_v46 = vadd.f32 %v1546_v45, %v1525_v34 }
 0x28f   : > { %1551 = vperm.xlu0 %2866, %v3440_v0   ;;  %v1547_v40 = vadd.f32 %v1545_v26, %v1523_v30 }
 0x290   : > { %1567 = vst [vmem:[#allocation3] sm:$0xff] %v1565_v41 }
 0x291   : > { %1568 = vst [vmem:[#allocation3 + $0x8] sm:$0xff] %v1566_v42 }
 0x297   : > { %1556 = vperm.xlu0 %2866, %v3442_v1  }
 0x301   : > { %v1552_v43 = vpop.permute.xlu0 %1551 }
 0x302   : > { %v1559_v44 = vmul.f32 %v1552_v43, %v1547_v40 }
 0x304   : > { %1561 = vst [vmem:[#allocation2 + $0x8] sm:$0xff] %v1559_v44 }
 0x309   : > { %v1557_v47 = vpop.permute.xlu0 %1556 }
 0x30a   : > { %v1560_v48 = vmul.f32 %v1557_v47, %v1548_v46 }
 0x30c   : > { %1562 = vst [vmem:[#allocation2 + $0x10] sm:$0xff] %v1560_v48 }
 0x30d PF: > { %p2517_p2 = scmp.ne.s32.totalorder %s3150_s22, 2 }
 0x30e   : > { %s3882_s28 = sld [smem:[#allocation39_spill]] (!%p2517_p2) }
 0x30f   : > { %1572 = sbr.rel (%p2517_p2) target bundleno = 1071 (0x42f), region = 88 }
 0x314   : > { %v2576_v49 = vld [vmem:[#allocation11 + $0x70] sm:$0xf]  ;;  %v2708_v51 = vld [vmem:[#allocation11 + $0x74] sm:$0xf0]  ;;  %v3175_v52 = vmov 0  }
 0x315   : > { %2867 = vset.pattern.permute.xlu0 %v3175_v52  ;;  %v2577_v53 = vor.u32 %v2708_v51, %v2576_v49  ;;  %v2707_v54 = vld [vmem:[#allocation11 + $0x74] sm:$0xf]  ;;  %v2578_v55 = vld [vmem:[#allocation11 + $0x78] sm:$0xf0]  ;;  %v2568_v56 = vld [vmem:[#allocation11 + $0x60] sm:$0xf] }
 0x316   : > { %1579 = vperm.xlu0 %2867, %v3440_v0   ;;  %v2581_v57 = vor.u32 %v2707_v54, %v2578_v55  ;;  %v2706_v59 = vld [vmem:[#allocation11 + $0x64] sm:$0xf0]  ;;  %v2705_v60 = vld [vmem:[#allocation11 + $0x64] sm:$0xf]  ;;  %v2570_v62 = vld [vmem:[#allocation11 + $0x68] sm:$0xf0] }
 0x317   : > { %1692 = vmatpush.bf16.msra.mxu0 %v2577_v53  ;;  %v2569_v63 = vor.u32 %v2706_v59, %v2568_v56  ;;  %v2573_v27 = vor.u32 %v2705_v60, %v2570_v62  ;;  %v2560_v50 = vld [vmem:[#allocation11 + $0x50] sm:$0xf]  ;;  %v2704_v2 = vld [vmem:[#allocation11 + $0x54] sm:$0xf0]  ;;  %v2703_v36 = vld [vmem:[#allocation11 + $0x54] sm:$0xf] }
 0x318   : > { %1706 = vmatpush.bf16.msra.mxu1 %v2581_v57  ;;  %v2562_v3 = vld [vmem:[#allocation11 + $0x58] sm:$0xf0]  ;;  %v2561_v4 = vor.u32 %v2704_v2, %v2560_v50  ;;  %v2552_v5 = vld [vmem:[#allocation11 + $0x40] sm:$0xf]  ;;  %v2702_v6 = vld [vmem:[#allocation11 + $0x44] sm:$0xf0] }
 0x319   : > { %v2565_v58 = vor.u32 %v2703_v36, %v2562_v3  ;;  %v2701_v7 = vld [vmem:[#allocation11 + $0x44] sm:$0xf]  ;;  %v2554_v0 = vld [vmem:[#allocation11 + $0x48] sm:$0xf0]  ;;  %v2553_v8 = vor.u32 %v2702_v6, %v2552_v5  ;;  %v2544_v10 = vld [vmem:[#allocation11 + $0x30] sm:$0xf] }
 0x31a   : > { %v2557_v9 = vor.u32 %v2701_v7, %v2554_v0  ;;  %v2700_v11 = vld [vmem:[#allocation11 + $0x34] sm:$0xf0]  ;;  %v2699_v61 = vld [vmem:[#allocation11 + $0x34] sm:$0xf]  ;;  %v2546_v12 = vld [vmem:[#allocation11 + $0x38] sm:$0xf0] }
 0x31b   : > { %1693 = vmatpush.bf16.msra.mxu0 %v2569_v63  ;;  %v2545_v13 = vor.u32 %v2700_v11, %v2544_v10  ;;  %v2549_v14 = vor.u32 %v2699_v61, %v2546_v12  ;;  %v2536_v15 = vld [vmem:[#allocation11 + $0x20] sm:$0xf]  ;;  %v2698_v16 = vld [vmem:[#allocation11 + $0x24] sm:$0xf0]  ;;  %v2697_v17 = vld [vmem:[#allocation11 + $0x24] sm:$0xf] }
 0x31c   : > { %1707 = vmatpush.bf16.msra.mxu1 %v2573_v27  ;;  %v2537_v18 = vor.u32 %v2698_v16, %v2536_v15  ;;  %v2538_v19 = vld [vmem:[#allocation11 + $0x28] sm:$0xf0]  ;;  %v2696_v20 = vld [vmem:[#allocation11 + $0x14] sm:$0xf0]  ;;  %v2695_v22 = vld [vmem:[#allocation11 + $0x14] sm:$0xf] }
 0x31d   : > { %v2541_v21 = vor.u32 %v2697_v17, %v2538_v19  ;;  %v2530_v23 = vld [vmem:[#allocation11 + $0x18] sm:$0xf0]  ;;  %v2520_v28 = vld [vmem:[#allocation11] sm:$0xf]  ;;  %v2694_v29 = vld [vmem:[#allocation11 + $0x4] sm:$0xf0] }
 0x31e   : > { %1584 = vperm.xlu0 %2867, %v3442_v1   ;;  %v2528_v1 = vld [vmem:[#allocation11 + $0x10] sm:$0xf]  ;;  %v2533_v25 = vor.u32 %v2695_v22, %v2530_v23  ;;  %v2693_v30 = vld [vmem:[#allocation11 + $0x4] sm:$0xf]  ;;  %v2521_v32 = vor.u32 %v2694_v29, %v2520_v28  ;;  %v2522_v33 = vld [vmem:[#allocation11 + $0x8] sm:$0xf0] }
 0x31f   : > { %1694 = vmatpush.bf16.msra.mxu0 %v2561_v4  ;;  %v2529_v24 = vor.u32 %v2696_v20, %v2528_v1  ;;  %v2525_v34 = vor.u32 %v2693_v30, %v2522_v33  ;;  %v1573_v38 = vld [vmem:[#allocation3] sm:$0xff]  ;;  %v1574_v39 = vld [vmem:[#allocation3 + $0x8] sm:$0xff] }
 0x320   : > { %1708 = vmatpush.bf16.msra.mxu1 %v2565_v58  ;;  %v1575_v41 = vadd.f32 %v1573_v38, %v3683_v31  ;;  %v1576_v42 = vadd.f32 %v1574_v39, %v3685_v35  ;;  %v1606_v45 = vld [vmem:[%s3882_s28] sm:$0x3]  ;;  %v1729_v3 = vld [vmem:[%s3438_s12 + $0x8] sm:$0xff] }
 0x321   : > { %v1608_v46 = vperm.slane %v1606_v45, 0  ;;  %v1609_v47 = vperm.slane %v1606_v45, 1  ;;  %v1728_v59 = vld [vmem:[%s3438_s12] sm:$0xff] }
 0x323   : > { %1695 = vmatpush.bf16.msra.mxu0 %v2553_v8 }
 0x324   : > { %1709 = vmatpush.bf16.msra.mxu1 %v2557_v9 }
 0x327   : > { %1696 = vmatpush.bf16.msra.mxu0 %v2545_v13 }
 0x328   : > { %1710 = vmatpush.bf16.msra.mxu1 %v2549_v14 }
 0x32b   : > { %1697 = vmatpush.bf16.msra.mxu0 %v2537_v18 }
 0x32c   : > { %1711 = vmatpush.bf16.msra.mxu1 %v2541_v21 }
 0x32f   : > { %1698 = vmatpush.bf16.msra.mxu0 %v2529_v24 }
 0x330   : > { %1712 = vmatpush.bf16.msra.mxu1 %v2533_v25 }
 0x333   : > { %1699 = vmatpush.bf16.msra.mxu0 %v2521_v32 }
 0x334   : > { %1713 = vmatpush.bf16.msra.mxu1 %v2525_v34 }
 0x388   : > { %v1580_v37 = vpop.permute.xlu0 %1579 }
 0x389   : > { %v1587_v40 = vmul.f32 %v1580_v37, %v1575_v41 }
 0x390   : > { %v1585_v26 = vpop.permute.xlu0 %1584 }
 0x391   : > { %v1588_v43 = vmul.f32 %v1585_v26, %v1576_v42 }
 0x393   : > { %v1589_v44 = vpack.c.bf16 %v1588_v43, %v1587_v40 }
 0x395   : > { %1700 = vmatmul.bf16.vlgmr.msra.gmra.mxu0 %v1589_v44  ;;  %1714 = vmatmul.bf16.vlgmr.msra.gmra.mxu1 %v1589_v44 }
 0x412   : > { %v1701_v48 = vpop.f32.mrf.mxu0  ;;  %v1715_v49 = vpop.f32.mrf.mxu1 }
 0x413   : > { %v1702_v31 = vadd.f32 %v1701_v48, %v1608_v46  ;;  %v1716_v35 = vadd.f32 %v1715_v49, %v1609_v47 }
 0x415   : > { %v1720_v51 = vmul.f32 %v1702_v31, %v1580_v37  ;;  %v1722_v52 = vmul.f32 %v1716_v35, %v1580_v37 }
 0x417   : > { %1738 = vst [vmem:[%s3457_s30] sm:$0xff] %v1720_v51  ;;  %v1724_v53 = vmul.f32 1.442695, %v1722_v52 }
 0x418   : > { %1740 = vst [vmem:[%s3459_s9] sm:$0xff] %v1722_v52 }
 0x419   : > { %2868 = vpow2.f32 %v1724_v53 }
 0x41a   : > { %v1703_v54 = vpop.f32.mrf.mxu0  ;;  %v1717_v55 = vpop.f32.mrf.mxu1 }
 0x41b   : > { %v1704_v56 = vadd.f32 %v1703_v54, %v1608_v46  ;;  %v1718_v57 = vadd.f32 %v1717_v55, %v1609_v47 }
 0x41d   : > { %v1721_v60 = vmul.f32 %v1704_v56, %v1585_v26  ;;  %v1723_v62 = vmul.f32 %v1718_v57, %v1585_v26 }
 0x41f   : > { %v2869_v63 = vpop.eup %2868  ;;  %1739 = vst [vmem:[%s3457_s30 + $0x8] sm:$0xff] %v1721_v60  ;;  %v1726_v27 = vmul.f32 1.442695, %v1723_v62 }
 0x420   : > { %v1730_v50 = vmul.f32 %v2869_v63, %v1728_v59  ;;  %1741 = vst [vmem:[%s3459_s9 + $0x8] sm:$0xff] %v1723_v62 }
 0x421   : > { %2870 = vpow2.f32 %v1726_v27 }
 0x422   : > { %v1732_v2 = vadd.f32 %v1730_v50, %v1720_v51 }
 0x424   : > { %v1734_v36 = vmul.f32 %v1732_v2, %v1580_v37 }
 0x426   : > { %1736 = vst [vmem:[%s3455_s1] sm:$0xff] %v1734_v36 }
 0x427   : > { %v2871_v4 = vpop.eup %2870 }
 0x428   : > { %v1731_v58 = vmul.f32 %v2871_v4, %v1729_v3 }
 0x42a   : > { %v1733_v5 = vadd.f32 %v1731_v58, %v1721_v60 }
 0x42c   : > { %v1735_v6 = vmul.f32 %v1733_v5, %v1585_v26 }
 0x42e   : > { %1737 = vst [vmem:[%s3455_s1 + $0x8] sm:$0xff] %v1735_v6 }
 0x42f PF: > { %s3709_s19 = sshll.u32 %s3154_s23, 4  ;;  %s3884_s16 = sld [smem:[#allocation41_spill]] }
 0x430   : > { %s1782_s17 = sshll.u32 %s3457_s30, 4  ;;  %s3885_s0 = sand.u32 1, %s3310_s27   ;;  %s1783_s17 = int_to_ptr.vmem [resolvable:$true] %s1782_s17 }
 0x431   : > { %s3718_s5 = scalar_lea.sflag [#allocation14], %s3885_s0 }
 0x435   : > { %s1781_s13 = scalar_lea.hbm %s3884_s16, %s3709_s19  ;;  %s2994_s15 = scalar_lea.hbm %s3884_s16, 32 }
 0x436   : > { %s1784_s12 = sshll.u32 %s1781_s13, 4  ;;  %s1785_s12 = int_to_ptr.hbm [resolvable:$true] %s1784_s12 }
 0x437   : > { %s2988_s7 = sshra.s32 %s1785_s12, 4  ;;  %s2989_s7 = int_to_ptr.hbm [resolvable:$true] %s2988_s7 }
 0x438   : > { %s2990_s11 = scalar_lea.hbm %s2989_s7, 16  ;;  %p2995_p8 = scmp.lt.s32.totalorder %s2989_s7, %s3884_s16 }
 0x439   : > { %p2991_p4 = scmp.ne.s32.totalorder %s2989_s7, %s2990_s11  ;;  %p2996_p10 = scmp.lt.s32.totalorder %s2994_s15, %s2990_s11 }
 0x43b   : > { %p2992_p5 = pnand %p2991_p4, %p3329_p7  ;;  %p2997_p12 = por %p2996_p10, %p2995_p8 }
 0x43d   : > { %p2993_p6 = pneg %p2992_p5 }
 0x43f   : > { %p2998_p13 = pnand %p2997_p12, %p2993_p6 }
 0x441   : > { %3001 = shalt.err (!%p2998_p13)
}
 0x442   : > { %s3176_s27 = smov 128   ;;  %s3177_s30 = smov 8  }
 0x443   : > { %2724 = dma.vmem_to_hbm [thread:$0]  (%p3329_p7), %s1783_s17, 256, %s1785_s12, %s3718_s5, %s3176_s27, %s3176_s27, %s3177_s30  }
 0x444   : > { %s3886_s28 = sld [smem:[#allocation40_spill]]  ;;  %s1765_s21 = sshll.u32 %s3455_s1, 4  ;;  %s1766_s21 = int_to_ptr.vmem [resolvable:$true] %s1765_s21 }
 0x445   : > { %s3887_s11 = sld [smem:[#allocation42_spill]]  ;;  %s3888_s4 = sand.u32 1, %s3130_s18  }
 0x446   : > { %s1743_s15 = scalar_lea.sflag [#allocation8], %s3888_s4 }
 0x44a   : > { %s1764_s3 = scalar_lea.hbm %s3886_s28, %s3709_s19  ;;  %s3022_s1 = scalar_lea.hbm %s3886_s28, 32 }
 0x44b   : > { %s1767_s13 = sshll.u32 %s1764_s3, 4  ;;  %s1798_s23 = scalar_lea.hbm %s3887_s11, %s3709_s19  ;;  %s1768_s13 = int_to_ptr.hbm [resolvable:$true] %s1767_s13 }
 0x44c   : > { %s3016_s29 = sshra.s32 %s1768_s13, 4  ;;  %s3017_s29 = int_to_ptr.hbm [resolvable:$true] %s3016_s29 }
 0x44d   : > { %s3018_s14 = scalar_lea.hbm %s3017_s29, 16  ;;  %p3023_p3 = scmp.lt.s32.totalorder %s3017_s29, %s3886_s28 }
 0x44e   : > { %p3019_p11 = scmp.ne.s32.totalorder %s3017_s29, %s3018_s14  ;;  %p3024_p2 = scmp.lt.s32.totalorder %s3022_s1, %s3018_s14 }
 0x450   : > { %p3020_p0 = pnand %p3019_p11, %p3329_p7  ;;  %p3025_p4 = por %p3024_p2, %p3023_p3 }
 0x452   : > { %p3021_p1 = pneg %p3020_p0 }
 0x454   : > { %p3026_p5 = pnand %p3025_p4, %p3021_p1 }
 0x456   : > { %3029 = shalt.err (!%p3026_p5)
}
 0x457   : > { %2723 = dma.vmem_to_hbm [thread:$0]  (%p3329_p7), %s1766_s21, 256, %s1768_s13, %s1743_s15, %s3176_s27, %s3176_s27, %s3177_s30  }
 0x458   : > { %s1799_s19 = sshll.u32 %s3459_s9, 4  ;;  %s1801_s3 = sshll.u32 %s1798_s23, 4  ;;  %s1800_s19 = int_to_ptr.vmem [resolvable:$true] %s1799_s19  ;;  %s1802_s3 = int_to_ptr.hbm [resolvable:$true] %s1801_s3 }
 0x459   : > { %s3044_s0 = sshra.s32 %s1802_s3, 4  ;;  %s3050_s14 = scalar_lea.hbm %s3887_s11, 32  ;;  %s3045_s0 = int_to_ptr.hbm [resolvable:$true] %s3044_s0 }
 0x45a   : > { %s3046_s7 = scalar_lea.hbm %s3045_s0, 16  ;;  %p3051_p12 = scmp.lt.s32.totalorder %s3045_s0, %s3887_s11 }
 0x45b   : > { %p3047_p6 = scmp.ne.s32.totalorder %s3045_s0, %s3046_s7  ;;  %p3052_p13 = scmp.lt.s32.totalorder %s3050_s14, %s3046_s7 }
 0x45d   : > { %p3048_p8 = pnand %p3047_p6, %p3329_p7  ;;  %p3053_p11 = por %p3052_p13, %p3051_p12 }
 0x45f   : > { %p3049_p10 = pneg %p3048_p8 }
 0x461   : > { %p3054_p0 = pnand %p3053_p11, %p3049_p10 }
 0x463   : > { %3057 = shalt.err (!%p3054_p0)
}
 0x464   : > { %2725 = dma.vmem_to_hbm [thread:$0]  (%p3329_p7), %s1800_s19, 256, %s1802_s3, %s3718_s5, %s3176_s27, %s3176_s27, %s3177_s30  }
 0x465 PF: > { %s3889_s9 = sld [smem:[#allocation22_spill]]  ;;  %p2753_p1 = scmp.ge.s32.totalorder %s3166_s26, 2 }
 0x467   : > { %p2741_p3 = pnand %p2753_p1, %p3334_p9 }
 0x469   : > { %p2742_p2 = pneg %p2741_p3 }
 0x46b   : > { %s1816_s13 = sand.u32 1, %s3889_s9  }
 0x46c   : > { %s1817_s23 = scalar_lea.sflag [#allocation8], %s1816_s13 }
 0x46d   : > { %3117 = dma.done.wait (%p2742_p2), %s1817_s23, 256  }
 0x46e   : > { %3119 = vsyncadd (%p2742_p2), %s1817_s23, 4294967040  ;;  %s3891_s15 = sadd.s32 4294967294, %s3166_s26  }
 0x46f   : > { %s1826_s10 = sand.u32 1, %s3891_s15  }
 0x470   : > { %s1827_s1 = scalar_lea.sflag [#allocation14], %s1826_s10 }
 0x471   : > { %3121 = dma.done.wait (%p2742_p2), %s1827_s1, 512  }
 0x472   : > { %3123 = vsyncadd (%p2742_p2), %s1827_s1, 4294966784  ;;  %s45_s26 = sadd.s32 1, %s3166_s26   ;;  %s3892_s5 = sld [smem:[#allocation23_spill]] }
 0x473   : > { %p42_p7 = scmp.ge.s32.totalorder %s45_s26, 8   ;;  %s3893_s19 = sld [smem:[#allocation31_spill]] }
 0x474   : > { %s3894_s27 = sld [smem:[#allocation24_spill]]  ;;  %s3899_s17 = smov %s3130_s18 }
 0x475   : > { %s3895_s21 = sld [smem:[#allocation30_spill]]  ;;  %s3901_s0 = smov %s3142_s20 }
 0x476   : > { %s3896_s23 = sld [smem:[#allocation25_spill]]  ;;  %s3903_s22 = smov %s3158_s24 }
 0x477   : > { %s3897_s30 = sld [smem:[#allocation28_spill]] }
 0x478   : > { %s3898_s25 = sld [smem:[#allocation29_spill]]  ;;  %s3900_s18 = smov %s3892_s5 }
 0x479   :  { %44 = sbr.rel (!%p42_p7) target bundleno = 29 (0x1d), region = 189 }
 0x47a   : > { %s3902_s20 = smov %s3894_s27 }
 0x47d   : > { %s3904_s24 = smov %s3897_s30 }
 0x47e   :  { %1843 = vsyncpa [#allocation7], 1 }
 0x47f   :  { %1845 = vsyncpa [#allocation7 + $0x1], 1 }
 0x480   :  { %1846 = vsyncpa [#allocation10], 1 }
 0x481   :  { %1848 = vsyncpa [#allocation10 + $0x1], 1 }
 0x482   :  { %1849 = vsyncpa [#allocation8], 1 }
 0x483   :  { %1851 = vsyncpa [#allocation8 + $0x1], 1 }
 0x484   :  { %1852 = vsyncpa [#allocation14], 1 }
 0x485   :  { %1854 = vsyncpa [#allocation14 + $0x1], 1 }

</bundles_post_ra>
